<compile_context>
chip_gen: v6e
topology: v6e:2x2x1
jax: 0.10.0
libtpu: 0.0.40
codegen_flags: <defaults>
</compile_context>

<pallas_src>
import math
from functools import partial

import jax
import jax.numpy as jnp
from jax.experimental import pallas as pl
from jax.experimental.pallas import tpu as pltpu

# ----------------------------- configuration ------------------------------
D_MODEL = 32
NHEAD = 4
DIM_FF = 64
NUM_LAYERS = 2
SEQ = 8
BATCH = 2
EPS = 1e-5


# ------------------------------ Pallas kernel ------------------------------
def _layer_norm(x, w, b):
    # x: (R, D) fp32, w/b: (1, D) fp32; biased variance like torch.nn.LayerNorm
    mu = jnp.mean(x, axis=-1, keepdims=True)
    xc = x - mu
    var = jnp.mean(xc * xc, axis=-1, keepdims=True)
    return xc * jax.lax.rsqrt(var + EPS) * w + b


def fused_encoder_kernel(
    x_ref, pos_ref,
    wqkv_ref, bqkv_ref, wo_ref, bo_ref,
    n1w_ref, n1b_ref, w1_ref, b1_ref, w2_ref, b2_ref,
    n2w_ref, n2b_ref,
    *rest,
    num_layers, batch, seq, nhead, final_norm,
):
    if final_norm:
        fnw_ref, fnb_ref, out_ref = rest
    else:
        (out_ref,) = rest

    x = x_ref[...]          # (B*S, D) fp32 activations, resident in VMEM across layers
    pos = pos_ref[...]      # (B*S, D) fp32
    BS, D = x.shape
    hd = D // nhead

    for l in range(num_layers):          # static unroll over layers
        wqkv = wqkv_ref[l]               # (D, 3D) bf16, Q columns pre-scaled by 1/sqrt(hd)
        bqkv = bqkv_ref[l]               # (1, 3D) fp32, Q slice pre-scaled

        # --- fused Q/K projection on (src+pos), V projection on src (one matmul each)
        x_pos = (x + pos).astype(jnp.bfloat16)
        qk = jnp.dot(x_pos, wqkv[:, : 2 * D],
                     preferred_element_type=jnp.float32) + bqkv[:, : 2 * D]
        v = jnp.dot(x.astype(jnp.bfloat16), wqkv[:, 2 * D:],
                    preferred_element_type=jnp.float32) + bqkv[:, 2 * D:]

        q3 = qk[:, :D].reshape(batch, seq, D)
        k3 = qk[:, D:].reshape(batch, seq, D)
        v3 = v.reshape(batch, seq, D)

        # --- per-head attention, batched over B (scale already folded into Q weights)
        head_ctx = []
        for h in range(nhead):
            sl = slice(h * hd, (h + 1) * hd)
            qh = q3[:, :, sl].astype(jnp.bfloat16)
            kh = k3[:, :, sl].astype(jnp.bfloat16)
            vh = v3[:, :, sl].astype(jnp.bfloat16)
            s = jnp.einsum("bqd,bkd->bqk", qh, kh,
                           preferred_element_type=jnp.float32)
            s = s - jnp.max(s, axis=-1, keepdims=True)
            p = jnp.exp(s)
            p = p * pl.reciprocal(jnp.sum(p, axis=-1, keepdims=True), approx=True)
            head_ctx.append(
                jnp.einsum("bqk,bkd->bqd", p.astype(jnp.bfloat16), vh,
                           preferred_element_type=jnp.float32))
        ctx = jnp.concatenate(head_ctx, axis=-1).reshape(BS, D)

        # --- output projection + residual + norm1 (fp32 VPU math)
        attn = jnp.dot(ctx.astype(jnp.bfloat16), wo_ref[l],
                       preferred_element_type=jnp.float32) + bo_ref[l]
        y = _layer_norm(x + attn, n1w_ref[l], n1b_ref[l])

        # --- FFN: linear1 -> relu -> linear2, residual + norm2
        h1 = jnp.dot(y.astype(jnp.bfloat16), w1_ref[l],
                     preferred_element_type=jnp.float32) + b1_ref[l]
        h1 = jnp.maximum(h1, 0.0)
        ffn = jnp.dot(h1.astype(jnp.bfloat16), w2_ref[l],
                      preferred_element_type=jnp.float32) + b2_ref[l]
        x = _layer_norm(y + ffn, n2w_ref[l], n2b_ref[l])

    if final_norm:
        x = _layer_norm(x, fnw_ref[...], fnb_ref[...])

    out_ref[...] = x.astype(out_ref.dtype)


# ------------------------------ wrapper -------------------------------------
def _prep_stacked_params(layer_params):
    """Pre-transpose / pre-scale per-layer weights and stack along a layer axis.

    MXU operands (big weight matrices) are cast to bf16; biases and LayerNorm
    parameters stay fp32 (they are consumed by the VPU).
    """
    D = layer_params[0][0].shape[1]
    hd = D // NHEAD
    scale = 1.0 / math.sqrt(hd)

    wqkv_s, bqkv_s, wo_s, bo_s = [], [], [], []
    n1w_s, n1b_s, w1_s, b1_s, w2_s, b2_s, n2w_s, n2b_s = ([] for _ in range(8))
    for (wqkv, bqkv, wo, bo, n1w, n1b, w1, b1, w2, b2, n2w, n2b) in layer_params:
        wqkv_t = wqkv.T                                              # (D, 3D): x @ W
        wqkv_t = jnp.concatenate([wqkv_t[:, :D] * scale, wqkv_t[:, D:]], axis=1)
        bqkv_t = jnp.concatenate([bqkv[:, :D] * scale, bqkv[:, D:]], axis=1)
        wqkv_s.append(wqkv_t); bqkv_s.append(bqkv_t)
        wo_s.append(wo.T);     bo_s.append(bo)
        n1w_s.append(n1w);     n1b_s.append(n1b)
        w1_s.append(w1.T);     b1_s.append(b1)
        w2_s.append(w2.T);     b2_s.append(b2)
        n2w_s.append(n2w);     n2b_s.append(n2b)

    bf16 = jnp.bfloat16
    return [
        jnp.stack(wqkv_s).astype(bf16),   # (L, D, 3D)
        jnp.stack(bqkv_s),                # (L, 1, 3D) fp32
        jnp.stack(wo_s).astype(bf16),     # (L, D, D)
        jnp.stack(bo_s),                  # (L, 1, D)  fp32
        jnp.stack(n1w_s), jnp.stack(n1b_s),
        jnp.stack(w1_s).astype(bf16),     # (L, D, F)
        jnp.stack(b1_s),                  # (L, 1, F)  fp32
        jnp.stack(w2_s).astype(bf16),     # (L, F, D)
        jnp.stack(b2_s),                  # (L, 1, D)  fp32
        jnp.stack(n2w_s), jnp.stack(n2b_s),
    ]


def _cost_hint(B, S, D, F, L, H):
    # matmul flops per layer: QK proj + V proj + scores + context + out proj + FFN
    per_layer = 2 * B * S * (2 * D * D + D * D + S * D + S * D + D * D + 2 * D * F)
    transcendentals = L * (H * B * S * S + H * B * S + 3 * B * S)
    return L * per_layer, transcendentals


def transformer_encoder_forward(src, pos, layer_params, norm_params=None):
    B, S, D = src.shape
    L = len(layer_params)
    stacked = _prep_stacked_params(layer_params)
    inputs = [src.reshape(B * S, D), pos.reshape(B * S, D)] + stacked
    final_norm = norm_params is not None
    if final_norm:
        inputs += [norm_params[0], norm_params[1]]

    flops, transc = _cost_hint(B, S, D, DIM_FF, L, NHEAD)
    bytes_accessed = int(sum(a.size * a.dtype.itemsize for a in inputs)) + B * S * D * 4

    kernel = partial(fused_encoder_kernel, num_layers=L, batch=B, seq=S,
                     nhead=NHEAD, final_norm=final_norm)
    vmem = pl.BlockSpec(memory_space=pltpu.MemorySpace.VMEM)
    out = pl.pallas_call(
        kernel,
        out_shape=jax.ShapeDtypeStruct((B * S, D), src.dtype),
        in_specs=[vmem] * len(inputs),
        out_specs=vmem,
        cost_estimate=pl.CostEstimate(flops=flops, transcendentals=transc,
                                      bytes_accessed=bytes_accessed),
    )(*inputs)
    return out.reshape(B, S, D)


# ------------------------- pure-JAX reference (fp32) ------------------------
def _ref_layer_norm(x, w, b):
    mu = jnp.mean(x, axis=-1, keepdims=True)
    var = jnp.mean((x - mu) ** 2, axis=-1, keepdims=True)
    return (x - mu) / jnp.sqrt(var + EPS) * w + b


def _ref_layer(x, pos, p):
    wqkv, bqkv, wo, bo, n1w, n1b, w1, b1, w2, b2, n2w, n2b = p
    D, H = D_MODEL, NHEAD
    hd = D // H
    qk_in = x + pos
    q = qk_in @ wqkv[0:D].T + bqkv[0, 0:D]
    k = qk_in @ wqkv[D:2 * D].T + bqkv[0, D:2 * D]
    v = x @ wqkv[2 * D:3 * D].T + bqkv[0, 2 * D:3 * D]
    B, S, _ = x.shape
    q = q.reshape(B, S, H, hd).transpose(0, 2, 1, 3)
    k = k.reshape(B, S, H, hd).transpose(0, 2, 1, 3)
    v = v.reshape(B, S, H, hd).transpose(0, 2, 1, 3)
    s = jnp.einsum("bhqd,bhkd->bhqk", q, k) / math.sqrt(hd)
    a = jax.nn.softmax(s, axis=-1)
    o = jnp.einsum("bhqk,bhkd->bhqd", a, v).transpose(0, 2, 1, 3).reshape(B, S, D)
    attn = o @ wo.T + bo[0]
    y = _ref_layer_norm(x + attn, n1w[0], n1b[0])
    ffn = jnp.maximum(y @ w1.T + b1[0], 0.0) @ w2.T + b2[0]
    return _ref_layer_norm(y + ffn, n2w[0], n2b[0])


def _ref_encoder(x, pos, layer_params, norm_params=None):
    out = x
    for p in layer_params:
        out = _ref_layer(out, pos, p)
    if norm_params is not None:
        out = _ref_layer_norm(out, norm_params[0][0], norm_params[1][0])
    return out


# ------------------------------- main ---------------------------------------
def init_layer_params(key):
    ks = jax.random.split(key, 12)
    D, F = D_MODEL, DIM_FF
    s = 0.1
    return (
        jax.random.normal(ks[0], (3 * D, D), jnp.float32) * s,        # in_proj_weight
        jax.random.normal(ks[1], (1, 3 * D), jnp.float32) * s,        # in_proj_bias
        jax.random.normal(ks[2], (D, D), jnp.float32) * s,            # out_proj.weight
        jax.random.normal(ks[3], (1, D), jnp.float32) * s,            # out_proj.bias
        1.0 + jax.random.normal(ks[4], (1, D), jnp.float32) * 0.05,   # norm1.weight
        jax.random.normal(ks[5], (1, D), jnp.float32) * 0.05,         # norm1.bias
        jax.random.normal(ks[6], (F, D), jnp.float32) * s,            # linear1.weight
        jax.random.normal(ks[7], (1, F), jnp.float32) * s,            # linear1.bias
        jax.random.normal(ks[8], (D, F), jnp.float32) * s,            # linear2.weight
        jax.random.normal(ks[9], (1, D), jnp.float32) * s,            # linear2.bias
        1.0 + jax.random.normal(ks[10], (1, D), jnp.float32) * 0.05,  # norm2.weight
        jax.random.normal(ks[11], (1, D), jnp.float32) * 0.05,        # norm2.bias
    )


if __name__ == "__main__":
    key = jax.random.PRNGKey(0)
    k_src, k_pos, k_layers, k_norm = jax.random.split(key, 4)

    src = jax.random.normal(k_src, (BATCH, SEQ, D_MODEL), jnp.float32)
    pos = jax.random.normal(k_pos, (BATCH, SEQ, D_MODEL), jnp.float32)

    layer_keys = jax.random.split(k_layers, NUM_LAYERS)
    layer_params = [init_layer_params(k) for k in layer_keys]

    # Matches TransformerEncoder(norm=None) / bare encoder-layer stack (DETR post-norm).
    norm_params = None

    out = transformer_encoder_forward(src, pos, layer_params, norm_params)
    out = jax.block_until_ready(out)

    ref = _ref_encoder(src, pos, layer_params, norm_params)
    assert out.shape == (BATCH, SEQ, D_MODEL)
    # Kernel uses bf16 MXU operands with fp32 accumulation (and approx-EUP reciprocal in
    # softmax), so tolerance is loosened vs the pure-fp32 reference; outputs are O(1)
    # after LayerNorm, so any structural bug would blow way past this bound.
    assert jnp.allclose(out, ref, atol=5e-2, rtol=5e-2), "mismatch vs reference"

    print("KERNEL_OK")
</pallas_src>

<mosaic_0001>
module attributes {stable_mosaic.version = 11 : i64} {
  func.func @fused_encoder_kernel(%arg0: memref<16x32xf32, #tpu.memory_space<vmem>>, %arg1: memref<16x32xf32, #tpu.memory_space<vmem>>, %arg2: memref<2x32x96xbf16, #tpu.memory_space<vmem>>, %arg3: memref<2x1x96xf32, #tpu.memory_space<vmem>>, %arg4: memref<2x32x32xbf16, #tpu.memory_space<vmem>>, %arg5: memref<2x1x32xf32, #tpu.memory_space<vmem>>, %arg6: memref<2x1x32xf32, #tpu.memory_space<vmem>>, %arg7: memref<2x1x32xf32, #tpu.memory_space<vmem>>, %arg8: memref<2x32x64xbf16, #tpu.memory_space<vmem>>, %arg9: memref<2x1x64xf32, #tpu.memory_space<vmem>>, %arg10: memref<2x64x32xbf16, #tpu.memory_space<vmem>>, %arg11: memref<2x1x32xf32, #tpu.memory_space<vmem>>, %arg12: memref<2x1x32xf32, #tpu.memory_space<vmem>>, %arg13: memref<2x1x32xf32, #tpu.memory_space<vmem>>, %arg14: memref<16x32xf32, #tpu.memory_space<vmem>>) attributes {dimension_semantics = [], scalar_prefetch = 0 : i64, scratch_operands = 0 : i64, tpu.core_type = #tpu.core_type<tc>} {
    %c0 = arith.constant 0 : index
    %c0_0 = arith.constant 0 : index
    %0 = vector.load %arg0[%c0, %c0_0] : memref<16x32xf32, #tpu.memory_space<vmem>>, vector<16x32xf32>
    %c0_1 = arith.constant 0 : index
    %c0_2 = arith.constant 0 : index
    %1 = vector.load %arg1[%c0_1, %c0_2] : memref<16x32xf32, #tpu.memory_space<vmem>>, vector<16x32xf32>
    %c0_3 = arith.constant 0 : index
    %c0_4 = arith.constant 0 : index
    %c0_5 = arith.constant 0 : index
    %2 = vector.load %arg2[%c0_3, %c0_4, %c0_5] : memref<2x32x96xbf16, #tpu.memory_space<vmem>>, vector<1x32x96xbf16>
    %3 = vector.shape_cast %2 : vector<1x32x96xbf16> to vector<32x96xbf16>
    %c0_6 = arith.constant 0 : index
    %c0_7 = arith.constant 0 : index
    %c0_8 = arith.constant 0 : index
    %4 = vector.load %arg3[%c0_6, %c0_7, %c0_8] : memref<2x1x96xf32, #tpu.memory_space<vmem>>, vector<1x1x96xf32>
    %5 = vector.shape_cast %4 : vector<1x1x96xf32> to vector<1x96xf32>
    %6 = arith.addf %0, %1 : vector<16x32xf32>
    %7 = arith.truncf %6 : vector<16x32xf32> to vector<16x32xbf16>
    %8 = vector.extract_strided_slice %3 {offsets = [0, 0], sizes = [32, 64], strides = [1, 1]} : vector<32x96xbf16> to vector<32x64xbf16>
    %cst = arith.constant dense<0.000000e+00> : vector<16x64xf32>
    %9 = tpu.matmul %7, %8, %cst {dimension_numbers = #tpu.dot_dimension_numbers<[1], [0], [0], [1], [0, 0, 1, 1], [], []>} : vector<16x32xbf16>, vector<32x64xbf16>, vector<16x64xf32> -> vector<16x64xf32>
    %10 = vector.extract_strided_slice %5 {offsets = [0, 0], sizes = [1, 64], strides = [1, 1]} : vector<1x96xf32> to vector<1x64xf32>
    %11 = vector.broadcast %10 : vector<1x64xf32> to vector<16x64xf32>
    %12 = arith.addf %9, %11 : vector<16x64xf32>
    %13 = arith.truncf %0 : vector<16x32xf32> to vector<16x32xbf16>
    %14 = vector.extract_strided_slice %3 {offsets = [0, 64], sizes = [32, 32], strides = [1, 1]} : vector<32x96xbf16> to vector<32x32xbf16>
    %cst_9 = arith.constant dense<0.000000e+00> : vector<16x32xf32>
    %15 = tpu.matmul %13, %14, %cst_9 {dimension_numbers = #tpu.dot_dimension_numbers<[1], [0], [0], [1], [0, 0, 1, 1], [], []>} : vector<16x32xbf16>, vector<32x32xbf16>, vector<16x32xf32> -> vector<16x32xf32>
    %16 = vector.extract_strided_slice %5 {offsets = [0, 64], sizes = [1, 32], strides = [1, 1]} : vector<1x96xf32> to vector<1x32xf32>
    %17 = vector.broadcast %16 : vector<1x32xf32> to vector<16x32xf32>
    %18 = arith.addf %15, %17 : vector<16x32xf32>
    %19 = vector.extract_strided_slice %12 {offsets = [0, 0], sizes = [16, 32], strides = [1, 1]} : vector<16x64xf32> to vector<16x32xf32>
    %20 = vector.shape_cast %19 : vector<16x32xf32> to vector<2x8x32xf32>
    %21 = vector.extract_strided_slice %12 {offsets = [0, 32], sizes = [16, 32], strides = [1, 1]} : vector<16x64xf32> to vector<16x32xf32>
    %22 = vector.shape_cast %21 : vector<16x32xf32> to vector<2x8x32xf32>
    %23 = vector.shape_cast %18 : vector<16x32xf32> to vector<2x8x32xf32>
    %24 = vector.extract_strided_slice %20 {offsets = [0, 0, 0], sizes = [2, 8, 8], strides = [1, 1, 1]} : vector<2x8x32xf32> to vector<2x8x8xf32>
    %25 = arith.truncf %24 : vector<2x8x8xf32> to vector<2x8x8xbf16>
    %26 = vector.extract_strided_slice %22 {offsets = [0, 0, 0], sizes = [2, 8, 8], strides = [1, 1, 1]} : vector<2x8x32xf32> to vector<2x8x8xf32>
    %27 = arith.truncf %26 : vector<2x8x8xf32> to vector<2x8x8xbf16>
    %28 = vector.extract_strided_slice %23 {offsets = [0, 0, 0], sizes = [2, 8, 8], strides = [1, 1, 1]} : vector<2x8x32xf32> to vector<2x8x8xf32>
    %29 = arith.truncf %28 : vector<2x8x8xf32> to vector<2x8x8xbf16>
    "tpu.trace_start"() <{level = 10 : i32, message = "bqd,bkd->bqk"}> : () -> ()
    %cst_10 = arith.constant dense<0.000000e+00> : vector<2x8x8xf32>
    %30 = tpu.matmul %25, %27, %cst_10 {dimension_numbers = #tpu.dot_dimension_numbers<[2], [2], [1], [1], [0, 0, 0, 1, 1, 1], [0], [0]>} : vector<2x8x8xbf16>, vector<2x8x8xbf16>, vector<2x8x8xf32> -> vector<2x8x8xf32>
    "tpu.trace_stop"() : () -> ()
    %cst_11 = arith.constant dense<0xFF800000> : vector<2x8xf32>
    %31 = vector.multi_reduction <maximumf>, %30, %cst_11 [2] : vector<2x8x8xf32> to vector<2x8xf32>
    %32 = vector.shape_cast %31 : vector<2x8xf32> to vector<2x8x1xf32>
    %33 = vector.broadcast %32 : vector<2x8x1xf32> to vector<2x8x8xf32>
    %34 = arith.subf %30, %33 : vector<2x8x8xf32>
    %35 = math.exp %34 : vector<2x8x8xf32>
    %cst_12 = arith.constant dense<0.000000e+00> : vector<2x8xf32>
    %36 = vector.multi_reduction <add>, %35, %cst_12 [2] : vector<2x8x8xf32> to vector<2x8xf32>
    %37 = vector.shape_cast %36 : vector<2x8xf32> to vector<2x8x1xf32>
    %38 = tpu.reciprocal %37 {approx = true} : vector<2x8x1xf32> -> vector<2x8x1xf32>
    %39 = vector.broadcast %38 : vector<2x8x1xf32> to vector<2x8x8xf32>
    %40 = arith.mulf %35, %39 : vector<2x8x8xf32>
    %41 = arith.truncf %40 : vector<2x8x8xf32> to vector<2x8x8xbf16>
    "tpu.trace_start"() <{level = 10 : i32, message = "bqk,bkd->bqd"}> : () -> ()
    %cst_13 = arith.constant dense<0.000000e+00> : vector<2x8x8xf32>
    %42 = tpu.matmul %41, %29, %cst_13 {dimension_numbers = #tpu.dot_dimension_numbers<[2], [1], [1], [2], [0, 0, 0, 1, 1, 2], [0], [0]>} : vector<2x8x8xbf16>, vector<2x8x8xbf16>, vector<2x8x8xf32> -> vector<2x8x8xf32>
    "tpu.trace_stop"() : () -> ()
    %43 = vector.extract_strided_slice %20 {offsets = [0, 0, 8], sizes = [2, 8, 8], strides = [1, 1, 1]} : vector<2x8x32xf32> to vector<2x8x8xf32>
    %44 = arith.truncf %43 : vector<2x8x8xf32> to vector<2x8x8xbf16>
    %45 = vector.extract_strided_slice %22 {offsets = [0, 0, 8], sizes = [2, 8, 8], strides = [1, 1, 1]} : vector<2x8x32xf32> to vector<2x8x8xf32>
    %46 = arith.truncf %45 : vector<2x8x8xf32> to vector<2x8x8xbf16>
    %47 = vector.extract_strided_slice %23 {offsets = [0, 0, 8], sizes = [2, 8, 8], strides = [1, 1, 1]} : vector<2x8x32xf32> to vector<2x8x8xf32>
    %48 = arith.truncf %47 : vector<2x8x8xf32> to vector<2x8x8xbf16>
    "tpu.trace_start"() <{level = 10 : i32, message = "bqd,bkd->bqk"}> : () -> ()
    %cst_14 = arith.constant dense<0.000000e+00> : vector<2x8x8xf32>
    %49 = tpu.matmul %44, %46, %cst_14 {dimension_numbers = #tpu.dot_dimension_numbers<[2], [2], [1], [1], [0, 0, 0, 1, 1, 1], [0], [0]>} : vector<2x8x8xbf16>, vector<2x8x8xbf16>, vector<2x8x8xf32> -> vector<2x8x8xf32>
    "tpu.trace_stop"() : () -> ()
    %cst_15 = arith.constant dense<0xFF800000> : vector<2x8xf32>
    %50 = vector.multi_reduction <maximumf>, %49, %cst_15 [2] : vector<2x8x8xf32> to vector<2x8xf32>
    %51 = vector.shape_cast %50 : vector<2x8xf32> to vector<2x8x1xf32>
    %52 = vector.broadcast %51 : vector<2x8x1xf32> to vector<2x8x8xf32>
    %53 = arith.subf %49, %52 : vector<2x8x8xf32>
    %54 = math.exp %53 : vector<2x8x8xf32>
    %cst_16 = arith.constant dense<0.000000e+00> : vector<2x8xf32>
    %55 = vector.multi_reduction <add>, %54, %cst_16 [2] : vector<2x8x8xf32> to vector<2x8xf32>
    %56 = vector.shape_cast %55 : vector<2x8xf32> to vector<2x8x1xf32>
    %57 = tpu.reciprocal %56 {approx = true} : vector<2x8x1xf32> -> vector<2x8x1xf32>
    %58 = vector.broadcast %57 : vector<2x8x1xf32> to vector<2x8x8xf32>
    %59 = arith.mulf %54, %58 : vector<2x8x8xf32>
    %60 = arith.truncf %59 : vector<2x8x8xf32> to vector<2x8x8xbf16>
    "tpu.trace_start"() <{level = 10 : i32, message = "bqk,bkd->bqd"}> : () -> ()
    %cst_17 = arith.constant dense<0.000000e+00> : vector<2x8x8xf32>
    %61 = tpu.matmul %60, %48, %cst_17 {dimension_numbers = #tpu.dot_dimension_numbers<[2], [1], [1], [2], [0, 0, 0, 1, 1, 2], [0], [0]>} : vector<2x8x8xbf16>, vector<2x8x8xbf16>, vector<2x8x8xf32> -> vector<2x8x8xf32>
    "tpu.trace_stop"() : () -> ()
    %62 = vector.extract_strided_slice %20 {offsets = [0, 0, 16], sizes = [2, 8, 8], strides = [1, 1, 1]} : vector<2x8x32xf32> to vector<2x8x8xf32>
    %63 = arith.truncf %62 : vector<2x8x8xf32> to vector<2x8x8xbf16>
    %64 = vector.extract_strided_slice %22 {offsets = [0, 0, 16], sizes = [2, 8, 8], strides = [1, 1, 1]} : vector<2x8x32xf32> to vector<2x8x8xf32>
    %65 = arith.truncf %64 : vector<2x8x8xf32> to vector<2x8x8xbf16>
    %66 = vector.extract_strided_slice %23 {offsets = [0, 0, 16], sizes = [2, 8, 8], strides = [1, 1, 1]} : vector<2x8x32xf32> to vector<2x8x8xf32>
    %67 = arith.truncf %66 : vector<2x8x8xf32> to vector<2x8x8xbf16>
    "tpu.trace_start"() <{level = 10 : i32, message = "bqd,bkd->bqk"}> : () -> ()
    %cst_18 = arith.constant dense<0.000000e+00> : vector<2x8x8xf32>
    %68 = tpu.matmul %63, %65, %cst_18 {dimension_numbers = #tpu.dot_dimension_numbers<[2], [2], [1], [1], [0, 0, 0, 1, 1, 1], [0], [0]>} : vector<2x8x8xbf16>, vector<2x8x8xbf16>, vector<2x8x8xf32> -> vector<2x8x8xf32>
    "tpu.trace_stop"() : () -> ()
    %cst_19 = arith.constant dense<0xFF800000> : vector<2x8xf32>
    %69 = vector.multi_reduction <maximumf>, %68, %cst_19 [2] : vector<2x8x8xf32> to vector<2x8xf32>
    %70 = vector.shape_cast %69 : vector<2x8xf32> to vector<2x8x1xf32>
    %71 = vector.broadcast %70 : vector<2x8x1xf32> to vector<2x8x8xf32>
    %72 = arith.subf %68, %71 : vector<2x8x8xf32>
    %73 = math.exp %72 : vector<2x8x8xf32>
    %cst_20 = arith.constant dense<0.000000e+00> : vector<2x8xf32>
    %74 = vector.multi_reduction <add>, %73, %cst_20 [2] : vector<2x8x8xf32> to vector<2x8xf32>
    %75 = vector.shape_cast %74 : vector<2x8xf32> to vector<2x8x1xf32>
    %76 = tpu.reciprocal %75 {approx = true} : vector<2x8x1xf32> -> vector<2x8x1xf32>
    %77 = vector.broadcast %76 : vector<2x8x1xf32> to vector<2x8x8xf32>
    %78 = arith.mulf %73, %77 : vector<2x8x8xf32>
    %79 = arith.truncf %78 : vector<2x8x8xf32> to vector<2x8x8xbf16>
    "tpu.trace_start"() <{level = 10 : i32, message = "bqk,bkd->bqd"}> : () -> ()
    %cst_21 = arith.constant dense<0.000000e+00> : vector<2x8x8xf32>
    %80 = tpu.matmul %79, %67, %cst_21 {dimension_numbers = #tpu.dot_dimension_numbers<[2], [1], [1], [2], [0, 0, 0, 1, 1, 2], [0], [0]>} : vector<2x8x8xbf16>, vector<2x8x8xbf16>, vector<2x8x8xf32> -> vector<2x8x8xf32>
    "tpu.trace_stop"() : () -> ()
    %81 = vector.extract_strided_slice %20 {offsets = [0, 0, 24], sizes = [2, 8, 8], strides = [1, 1, 1]} : vector<2x8x32xf32> to vector<2x8x8xf32>
    %82 = arith.truncf %81 : vector<2x8x8xf32> to vector<2x8x8xbf16>
    %83 = vector.extract_strided_slice %22 {offsets = [0, 0, 24], sizes = [2, 8, 8], strides = [1, 1, 1]} : vector<2x8x32xf32> to vector<2x8x8xf32>
    %84 = arith.truncf %83 : vector<2x8x8xf32> to vector<2x8x8xbf16>
    %85 = vector.extract_strided_slice %23 {offsets = [0, 0, 24], sizes = [2, 8, 8], strides = [1, 1, 1]} : vector<2x8x32xf32> to vector<2x8x8xf32>
    %86 = arith.truncf %85 : vector<2x8x8xf32> to vector<2x8x8xbf16>
    "tpu.trace_start"() <{level = 10 : i32, message = "bqd,bkd->bqk"}> : () -> ()
    %cst_22 = arith.constant dense<0.000000e+00> : vector<2x8x8xf32>
    %87 = tpu.matmul %82, %84, %cst_22 {dimension_numbers = #tpu.dot_dimension_numbers<[2], [2], [1], [1], [0, 0, 0, 1, 1, 1], [0], [0]>} : vector<2x8x8xbf16>, vector<2x8x8xbf16>, vector<2x8x8xf32> -> vector<2x8x8xf32>
    "tpu.trace_stop"() : () -> ()
    %cst_23 = arith.constant dense<0xFF800000> : vector<2x8xf32>
    %88 = vector.multi_reduction <maximumf>, %87, %cst_23 [2] : vector<2x8x8xf32> to vector<2x8xf32>
    %89 = vector.shape_cast %88 : vector<2x8xf32> to vector<2x8x1xf32>
    %90 = vector.broadcast %89 : vector<2x8x1xf32> to vector<2x8x8xf32>
    %91 = arith.subf %87, %90 : vector<2x8x8xf32>
    %92 = math.exp %91 : vector<2x8x8xf32>
    %cst_24 = arith.constant dense<0.000000e+00> : vector<2x8xf32>
    %93 = vector.multi_reduction <add>, %92, %cst_24 [2] : vector<2x8x8xf32> to vector<2x8xf32>
    %94 = vector.shape_cast %93 : vector<2x8xf32> to vector<2x8x1xf32>
    %95 = tpu.reciprocal %94 {approx = true} : vector<2x8x1xf32> -> vector<2x8x1xf32>
    %96 = vector.broadcast %95 : vector<2x8x1xf32> to vector<2x8x8xf32>
    %97 = arith.mulf %92, %96 : vector<2x8x8xf32>
    %98 = arith.truncf %97 : vector<2x8x8xf32> to vector<2x8x8xbf16>
    "tpu.trace_start"() <{level = 10 : i32, message = "bqk,bkd->bqd"}> : () -> ()
    %cst_25 = arith.constant dense<0.000000e+00> : vector<2x8x8xf32>
    %99 = tpu.matmul %98, %86, %cst_25 {dimension_numbers = #tpu.dot_dimension_numbers<[2], [1], [1], [2], [0, 0, 0, 1, 1, 2], [0], [0]>} : vector<2x8x8xbf16>, vector<2x8x8xbf16>, vector<2x8x8xf32> -> vector<2x8x8xf32>
    "tpu.trace_stop"() : () -> ()
    %100 = tpu.concatenate %42, %61, %80, %99 in 2 : vector<2x8x8xf32>, vector<2x8x8xf32>, vector<2x8x8xf32>, vector<2x8x8xf32> -> vector<2x8x32xf32>
    %101 = vector.shape_cast %100 : vector<2x8x32xf32> to vector<16x32xf32>
    %102 = arith.truncf %101 : vector<16x32xf32> to vector<16x32xbf16>
    %c0_26 = arith.constant 0 : index
    %c0_27 = arith.constant 0 : index
    %c0_28 = arith.constant 0 : index
    %103 = vector.load %arg4[%c0_26, %c0_27, %c0_28] : memref<2x32x32xbf16, #tpu.memory_space<vmem>>, vector<1x32x32xbf16>
    %104 = vector.shape_cast %103 : vector<1x32x32xbf16> to vector<32x32xbf16>
    %cst_29 = arith.constant dense<0.000000e+00> : vector<16x32xf32>
    %105 = tpu.matmul %102, %104, %cst_29 {dimension_numbers = #tpu.dot_dimension_numbers<[1], [0], [0], [1], [0, 0, 1, 1], [], []>} : vector<16x32xbf16>, vector<32x32xbf16>, vector<16x32xf32> -> vector<16x32xf32>
    %c0_30 = arith.constant 0 : index
    %c0_31 = arith.constant 0 : index
    %c0_32 = arith.constant 0 : index
    %106 = vector.load %arg5[%c0_30, %c0_31, %c0_32] : memref<2x1x32xf32, #tpu.memory_space<vmem>>, vector<1x1x32xf32>
    %107 = vector.shape_cast %106 : vector<1x1x32xf32> to vector<1x32xf32>
    %108 = vector.broadcast %107 : vector<1x32xf32> to vector<16x32xf32>
    %109 = arith.addf %105, %108 : vector<16x32xf32>
    %110 = arith.addf %0, %109 : vector<16x32xf32>
    %c0_33 = arith.constant 0 : index
    %c0_34 = arith.constant 0 : index
    %c0_35 = arith.constant 0 : index
    %111 = vector.load %arg6[%c0_33, %c0_34, %c0_35] : memref<2x1x32xf32, #tpu.memory_space<vmem>>, vector<1x1x32xf32>
    %112 = vector.shape_cast %111 : vector<1x1x32xf32> to vector<1x32xf32>
    %c0_36 = arith.constant 0 : index
    %c0_37 = arith.constant 0 : index
    %c0_38 = arith.constant 0 : index
    %113 = vector.load %arg7[%c0_36, %c0_37, %c0_38] : memref<2x1x32xf32, #tpu.memory_space<vmem>>, vector<1x1x32xf32>
    %114 = vector.shape_cast %113 : vector<1x1x32xf32> to vector<1x32xf32>
    %cst_39 = arith.constant dense<0.000000e+00> : vector<16xf32>
    %115 = vector.multi_reduction <add>, %110, %cst_39 [1] : vector<16x32xf32> to vector<16xf32>
    %116 = vector.shape_cast %115 : vector<16xf32> to vector<16x1xf32>
    %cst_40 = arith.constant 3.200000e+01 : f32
    %117 = vector.broadcast %cst_40 : f32 to vector<16x1xf32>
    %118 = arith.divf %116, %117 : vector<16x1xf32>
    %119 = vector.broadcast %118 : vector<16x1xf32> to vector<16x32xf32>
    %120 = arith.subf %110, %119 : vector<16x32xf32>
    %121 = arith.mulf %120, %120 : vector<16x32xf32>
    %cst_41 = arith.constant dense<0.000000e+00> : vector<16xf32>
    %122 = vector.multi_reduction <add>, %121, %cst_41 [1] : vector<16x32xf32> to vector<16xf32>
    %123 = vector.shape_cast %122 : vector<16xf32> to vector<16x1xf32>
    %cst_42 = arith.constant 3.200000e+01 : f32
    %124 = vector.broadcast %cst_42 : f32 to vector<16x1xf32>
    %125 = arith.divf %123, %124 : vector<16x1xf32>
    %cst_43 = arith.constant 9.99999974E-6 : f32
    %126 = vector.broadcast %cst_43 : f32 to vector<16x1xf32>
    %127 = arith.addf %125, %126 : vector<16x1xf32>
    %128 = math.rsqrt %127 : vector<16x1xf32>
    %129 = vector.broadcast %128 : vector<16x1xf32> to vector<16x32xf32>
    %130 = arith.mulf %120, %129 : vector<16x32xf32>
    %131 = vector.broadcast %112 : vector<1x32xf32> to vector<16x32xf32>
    %132 = arith.mulf %130, %131 : vector<16x32xf32>
    %133 = vector.broadcast %114 : vector<1x32xf32> to vector<16x32xf32>
    %134 = arith.addf %132, %133 : vector<16x32xf32>
    %135 = arith.truncf %134 : vector<16x32xf32> to vector<16x32xbf16>
    %c0_44 = arith.constant 0 : index
    %c0_45 = arith.constant 0 : index
    %c0_46 = arith.constant 0 : index
    %136 = vector.load %arg8[%c0_44, %c0_45, %c0_46] : memref<2x32x64xbf16, #tpu.memory_space<vmem>>, vector<1x32x64xbf16>
    %137 = vector.shape_cast %136 : vector<1x32x64xbf16> to vector<32x64xbf16>
    %cst_47 = arith.constant dense<0.000000e+00> : vector<16x64xf32>
    %138 = tpu.matmul %135, %137, %cst_47 {dimension_numbers = #tpu.dot_dimension_numbers<[1], [0], [0], [1], [0, 0, 1, 1], [], []>} : vector<16x32xbf16>, vector<32x64xbf16>, vector<16x64xf32> -> vector<16x64xf32>
    %c0_48 = arith.constant 0 : index
    %c0_49 = arith.constant 0 : index
    %c0_50 = arith.constant 0 : index
    %139 = vector.load %arg9[%c0_48, %c0_49, %c0_50] : memref<2x1x64xf32, #tpu.memory_space<vmem>>, vector<1x1x64xf32>
    %140 = vector.shape_cast %139 : vector<1x1x64xf32> to vector<1x64xf32>
    %141 = vector.broadcast %140 : vector<1x64xf32> to vector<16x64xf32>
    %142 = arith.addf %138, %141 : vector<16x64xf32>
    %cst_51 = arith.constant 0.000000e+00 : f32
    %143 = vector.broadcast %cst_51 : f32 to vector<16x64xf32>
    %144 = arith.maximumf %142, %143 : vector<16x64xf32>
    %145 = arith.truncf %144 : vector<16x64xf32> to vector<16x64xbf16>
    %c0_52 = arith.constant 0 : index
    %c0_53 = arith.constant 0 : index
    %c0_54 = arith.constant 0 : index
    %146 = vector.load %arg10[%c0_52, %c0_53, %c0_54] : memref<2x64x32xbf16, #tpu.memory_space<vmem>>, vector<1x64x32xbf16>
    %147 = vector.shape_cast %146 : vector<1x64x32xbf16> to vector<64x32xbf16>
    %cst_55 = arith.constant dense<0.000000e+00> : vector<16x32xf32>
    %148 = tpu.matmul %145, %147, %cst_55 {dimension_numbers = #tpu.dot_dimension_numbers<[1], [0], [0], [1], [0, 0, 1, 1], [], []>} : vector<16x64xbf16>, vector<64x32xbf16>, vector<16x32xf32> -> vector<16x32xf32>
    %c0_56 = arith.constant 0 : index
    %c0_57 = arith.constant 0 : index
    %c0_58 = arith.constant 0 : index
    %149 = vector.load %arg11[%c0_56, %c0_57, %c0_58] : memref<2x1x32xf32, #tpu.memory_space<vmem>>, vector<1x1x32xf32>
    %150 = vector.shape_cast %149 : vector<1x1x32xf32> to vector<1x32xf32>
    %151 = vector.broadcast %150 : vector<1x32xf32> to vector<16x32xf32>
    %152 = arith.addf %148, %151 : vector<16x32xf32>
    %153 = arith.addf %134, %152 : vector<16x32xf32>
    %c0_59 = arith.constant 0 : index
    %c0_60 = arith.constant 0 : index
    %c0_61 = arith.constant 0 : index
    %154 = vector.load %arg12[%c0_59, %c0_60, %c0_61] : memref<2x1x32xf32, #tpu.memory_space<vmem>>, vector<1x1x32xf32>
    %155 = vector.shape_cast %154 : vector<1x1x32xf32> to vector<1x32xf32>
    %c0_62 = arith.constant 0 : index
    %c0_63 = arith.constant 0 : index
    %c0_64 = arith.constant 0 : index
    %156 = vector.load %arg13[%c0_62, %c0_63, %c0_64] : memref<2x1x32xf32, #tpu.memory_space<vmem>>, vector<1x1x32xf32>
    %157 = vector.shape_cast %156 : vector<1x1x32xf32> to vector<1x32xf32>
    %cst_65 = arith.constant dense<0.000000e+00> : vector<16xf32>
    %158 = vector.multi_reduction <add>, %153, %cst_65 [1] : vector<16x32xf32> to vector<16xf32>
    %159 = vector.shape_cast %158 : vector<16xf32> to vector<16x1xf32>
    %cst_66 = arith.constant 3.200000e+01 : f32
    %160 = vector.broadcast %cst_66 : f32 to vector<16x1xf32>
    %161 = arith.divf %159, %160 : vector<16x1xf32>
    %162 = vector.broadcast %161 : vector<16x1xf32> to vector<16x32xf32>
    %163 = arith.subf %153, %162 : vector<16x32xf32>
    %164 = arith.mulf %163, %163 : vector<16x32xf32>
    %cst_67 = arith.constant dense<0.000000e+00> : vector<16xf32>
    %165 = vector.multi_reduction <add>, %164, %cst_67 [1] : vector<16x32xf32> to vector<16xf32>
    %166 = vector.shape_cast %165 : vector<16xf32> to vector<16x1xf32>
    %cst_68 = arith.constant 3.200000e+01 : f32
    %167 = vector.broadcast %cst_68 : f32 to vector<16x1xf32>
    %168 = arith.divf %166, %167 : vector<16x1xf32>
    %cst_69 = arith.constant 9.99999974E-6 : f32
    %169 = vector.broadcast %cst_69 : f32 to vector<16x1xf32>
    %170 = arith.addf %168, %169 : vector<16x1xf32>
    %171 = math.rsqrt %170 : vector<16x1xf32>
    %172 = vector.broadcast %171 : vector<16x1xf32> to vector<16x32xf32>
    %173 = arith.mulf %163, %172 : vector<16x32xf32>
    %174 = vector.broadcast %155 : vector<1x32xf32> to vector<16x32xf32>
    %175 = arith.mulf %173, %174 : vector<16x32xf32>
    %176 = vector.broadcast %157 : vector<1x32xf32> to vector<16x32xf32>
    %177 = arith.addf %175, %176 : vector<16x32xf32>
    %c1 = arith.constant 1 : index
    %c0_70 = arith.constant 0 : index
    %c0_71 = arith.constant 0 : index
    %178 = vector.load %arg2[%c1, %c0_70, %c0_71] : memref<2x32x96xbf16, #tpu.memory_space<vmem>>, vector<1x32x96xbf16>
    %179 = vector.shape_cast %178 : vector<1x32x96xbf16> to vector<32x96xbf16>
    %c1_72 = arith.constant 1 : index
    %c0_73 = arith.constant 0 : index
    %c0_74 = arith.constant 0 : index
    %180 = vector.load %arg3[%c1_72, %c0_73, %c0_74] : memref<2x1x96xf32, #tpu.memory_space<vmem>>, vector<1x1x96xf32>
    %181 = vector.shape_cast %180 : vector<1x1x96xf32> to vector<1x96xf32>
    %182 = arith.addf %177, %1 : vector<16x32xf32>
    %183 = arith.truncf %182 : vector<16x32xf32> to vector<16x32xbf16>
    %184 = vector.extract_strided_slice %179 {offsets = [0, 0], sizes = [32, 64], strides = [1, 1]} : vector<32x96xbf16> to vector<32x64xbf16>
    %cst_75 = arith.constant dense<0.000000e+00> : vector<16x64xf32>
    %185 = tpu.matmul %183, %184, %cst_75 {dimension_numbers = #tpu.dot_dimension_numbers<[1], [0], [0], [1], [0, 0, 1, 1], [], []>} : vector<16x32xbf16>, vector<32x64xbf16>, vector<16x64xf32> -> vector<16x64xf32>
    %186 = vector.extract_strided_slice %181 {offsets = [0, 0], sizes = [1, 64], strides = [1, 1]} : vector<1x96xf32> to vector<1x64xf32>
    %187 = vector.broadcast %186 : vector<1x64xf32> to vector<16x64xf32>
    %188 = arith.addf %185, %187 : vector<16x64xf32>
    %189 = arith.truncf %177 : vector<16x32xf32> to vector<16x32xbf16>
    %190 = vector.extract_strided_slice %179 {offsets = [0, 64], sizes = [32, 32], strides = [1, 1]} : vector<32x96xbf16> to vector<32x32xbf16>
    %cst_76 = arith.constant dense<0.000000e+00> : vector<16x32xf32>
    %191 = tpu.matmul %189, %190, %cst_76 {dimension_numbers = #tpu.dot_dimension_numbers<[1], [0], [0], [1], [0, 0, 1, 1], [], []>} : vector<16x32xbf16>, vector<32x32xbf16>, vector<16x32xf32> -> vector<16x32xf32>
    %192 = vector.extract_strided_slice %181 {offsets = [0, 64], sizes = [1, 32], strides = [1, 1]} : vector<1x96xf32> to vector<1x32xf32>
    %193 = vector.broadcast %192 : vector<1x32xf32> to vector<16x32xf32>
    %194 = arith.addf %191, %193 : vector<16x32xf32>
    %195 = vector.extract_strided_slice %188 {offsets = [0, 0], sizes = [16, 32], strides = [1, 1]} : vector<16x64xf32> to vector<16x32xf32>
    %196 = vector.shape_cast %195 : vector<16x32xf32> to vector<2x8x32xf32>
    %197 = vector.extract_strided_slice %188 {offsets = [0, 32], sizes = [16, 32], strides = [1, 1]} : vector<16x64xf32> to vector<16x32xf32>
    %198 = vector.shape_cast %197 : vector<16x32xf32> to vector<2x8x32xf32>
    %199 = vector.shape_cast %194 : vector<16x32xf32> to vector<2x8x32xf32>
    %200 = vector.extract_strided_slice %196 {offsets = [0, 0, 0], sizes = [2, 8, 8], strides = [1, 1, 1]} : vector<2x8x32xf32> to vector<2x8x8xf32>
    %201 = arith.truncf %200 : vector<2x8x8xf32> to vector<2x8x8xbf16>
    %202 = vector.extract_strided_slice %198 {offsets = [0, 0, 0], sizes = [2, 8, 8], strides = [1, 1, 1]} : vector<2x8x32xf32> to vector<2x8x8xf32>
    %203 = arith.truncf %202 : vector<2x8x8xf32> to vector<2x8x8xbf16>
    %204 = vector.extract_strided_slice %199 {offsets = [0, 0, 0], sizes = [2, 8, 8], strides = [1, 1, 1]} : vector<2x8x32xf32> to vector<2x8x8xf32>
    %205 = arith.truncf %204 : vector<2x8x8xf32> to vector<2x8x8xbf16>
    "tpu.trace_start"() <{level = 10 : i32, message = "bqd,bkd->bqk"}> : () -> ()
    %cst_77 = arith.constant dense<0.000000e+00> : vector<2x8x8xf32>
    %206 = tpu.matmul %201, %203, %cst_77 {dimension_numbers = #tpu.dot_dimension_numbers<[2], [2], [1], [1], [0, 0, 0, 1, 1, 1], [0], [0]>} : vector<2x8x8xbf16>, vector<2x8x8xbf16>, vector<2x8x8xf32> -> vector<2x8x8xf32>
    "tpu.trace_stop"() : () -> ()
    %cst_78 = arith.constant dense<0xFF800000> : vector<2x8xf32>
    %207 = vector.multi_reduction <maximumf>, %206, %cst_78 [2] : vector<2x8x8xf32> to vector<2x8xf32>
    %208 = vector.shape_cast %207 : vector<2x8xf32> to vector<2x8x1xf32>
    %209 = vector.broadcast %208 : vector<2x8x1xf32> to vector<2x8x8xf32>
    %210 = arith.subf %206, %209 : vector<2x8x8xf32>
    %211 = math.exp %210 : vector<2x8x8xf32>
    %cst_79 = arith.constant dense<0.000000e+00> : vector<2x8xf32>
    %212 = vector.multi_reduction <add>, %211, %cst_79 [2] : vector<2x8x8xf32> to vector<2x8xf32>
    %213 = vector.shape_cast %212 : vector<2x8xf32> to vector<2x8x1xf32>
    %214 = tpu.reciprocal %213 {approx = true} : vector<2x8x1xf32> -> vector<2x8x1xf32>
    %215 = vector.broadcast %214 : vector<2x8x1xf32> to vector<2x8x8xf32>
    %216 = arith.mulf %211, %215 : vector<2x8x8xf32>
    %217 = arith.truncf %216 : vector<2x8x8xf32> to vector<2x8x8xbf16>
    "tpu.trace_start"() <{level = 10 : i32, message = "bqk,bkd->bqd"}> : () -> ()
    %cst_80 = arith.constant dense<0.000000e+00> : vector<2x8x8xf32>
    %218 = tpu.matmul %217, %205, %cst_80 {dimension_numbers = #tpu.dot_dimension_numbers<[2], [1], [1], [2], [0, 0, 0, 1, 1, 2], [0], [0]>} : vector<2x8x8xbf16>, vector<2x8x8xbf16>, vector<2x8x8xf32> -> vector<2x8x8xf32>
    "tpu.trace_stop"() : () -> ()
    %219 = vector.extract_strided_slice %196 {offsets = [0, 0, 8], sizes = [2, 8, 8], strides = [1, 1, 1]} : vector<2x8x32xf32> to vector<2x8x8xf32>
    %220 = arith.truncf %219 : vector<2x8x8xf32> to vector<2x8x8xbf16>
    %221 = vector.extract_strided_slice %198 {offsets = [0, 0, 8], sizes = [2, 8, 8], strides = [1, 1, 1]} : vector<2x8x32xf32> to vector<2x8x8xf32>
    %222 = arith.truncf %221 : vector<2x8x8xf32> to vector<2x8x8xbf16>
    %223 = vector.extract_strided_slice %199 {offsets = [0, 0, 8], sizes = [2, 8, 8], strides = [1, 1, 1]} : vector<2x8x32xf32> to vector<2x8x8xf32>
    %224 = arith.truncf %223 : vector<2x8x8xf32> to vector<2x8x8xbf16>
    "tpu.trace_start"() <{level = 10 : i32, message = "bqd,bkd->bqk"}> : () -> ()
    %cst_81 = arith.constant dense<0.000000e+00> : vector<2x8x8xf32>
    %225 = tpu.matmul %220, %222, %cst_81 {dimension_numbers = #tpu.dot_dimension_numbers<[2], [2], [1], [1], [0, 0, 0, 1, 1, 1], [0], [0]>} : vector<2x8x8xbf16>, vector<2x8x8xbf16>, vector<2x8x8xf32> -> vector<2x8x8xf32>
    "tpu.trace_stop"() : () -> ()
    %cst_82 = arith.constant dense<0xFF800000> : vector<2x8xf32>
    %226 = vector.multi_reduction <maximumf>, %225, %cst_82 [2] : vector<2x8x8xf32> to vector<2x8xf32>
    %227 = vector.shape_cast %226 : vector<2x8xf32> to vector<2x8x1xf32>
    %228 = vector.broadcast %227 : vector<2x8x1xf32> to vector<2x8x8xf32>
    %229 = arith.subf %225, %228 : vector<2x8x8xf32>
    %230 = math.exp %229 : vector<2x8x8xf32>
    %cst_83 = arith.constant dense<0.000000e+00> : vector<2x8xf32>
    %231 = vector.multi_reduction <add>, %230, %cst_83 [2] : vector<2x8x8xf32> to vector<2x8xf32>
    %232 = vector.shape_cast %231 : vector<2x8xf32> to vector<2x8x1xf32>
    %233 = tpu.reciprocal %232 {approx = true} : vector<2x8x1xf32> -> vector<2x8x1xf32>
    %234 = vector.broadcast %233 : vector<2x8x1xf32> to vector<2x8x8xf32>
    %235 = arith.mulf %230, %234 : vector<2x8x8xf32>
    %236 = arith.truncf %235 : vector<2x8x8xf32> to vector<2x8x8xbf16>
    "tpu.trace_start"() <{level = 10 : i32, message = "bqk,bkd->bqd"}> : () -> ()
    %cst_84 = arith.constant dense<0.000000e+00> : vector<2x8x8xf32>
    %237 = tpu.matmul %236, %224, %cst_84 {dimension_numbers = #tpu.dot_dimension_numbers<[2], [1], [1], [2], [0, 0, 0, 1, 1, 2], [0], [0]>} : vector<2x8x8xbf16>, vector<2x8x8xbf16>, vector<2x8x8xf32> -> vector<2x8x8xf32>
    "tpu.trace_stop"() : () -> ()
    %238 = vector.extract_strided_slice %196 {offsets = [0, 0, 16], sizes = [2, 8, 8], strides = [1, 1, 1]} : vector<2x8x32xf32> to vector<2x8x8xf32>
    %239 = arith.truncf %238 : vector<2x8x8xf32> to vector<2x8x8xbf16>
    %240 = vector.extract_strided_slice %198 {offsets = [0, 0, 16], sizes = [2, 8, 8], strides = [1, 1, 1]} : vector<2x8x32xf32> to vector<2x8x8xf32>
    %241 = arith.truncf %240 : vector<2x8x8xf32> to vector<2x8x8xbf16>
    %242 = vector.extract_strided_slice %199 {offsets = [0, 0, 16], sizes = [2, 8, 8], strides = [1, 1, 1]} : vector<2x8x32xf32> to vector<2x8x8xf32>
    %243 = arith.truncf %242 : vector<2x8x8xf32> to vector<2x8x8xbf16>
    "tpu.trace_start"() <{level = 10 : i32, message = "bqd,bkd->bqk"}> : () -> ()
    %cst_85 = arith.constant dense<0.000000e+00> : vector<2x8x8xf32>
    %244 = tpu.matmul %239, %241, %cst_85 {dimension_numbers = #tpu.dot_dimension_numbers<[2], [2], [1], [1], [0, 0, 0, 1, 1, 1], [0], [0]>} : vector<2x8x8xbf16>, vector<2x8x8xbf16>, vector<2x8x8xf32> -> vector<2x8x8xf32>
    "tpu.trace_stop"() : () -> ()
    %cst_86 = arith.constant dense<0xFF800000> : vector<2x8xf32>
    %245 = vector.multi_reduction <maximumf>, %244, %cst_86 [2] : vector<2x8x8xf32> to vector<2x8xf32>
    %246 = vector.shape_cast %245 : vector<2x8xf32> to vector<2x8x1xf32>
    %247 = vector.broadcast %246 : vector<2x8x1xf32> to vector<2x8x8xf32>
    %248 = arith.subf %244, %247 : vector<2x8x8xf32>
    %249 = math.exp %248 : vector<2x8x8xf32>
    %cst_87 = arith.constant dense<0.000000e+00> : vector<2x8xf32>
    %250 = vector.multi_reduction <add>, %249, %cst_87 [2] : vector<2x8x8xf32> to vector<2x8xf32>
    %251 = vector.shape_cast %250 : vector<2x8xf32> to vector<2x8x1xf32>
    %252 = tpu.reciprocal %251 {approx = true} : vector<2x8x1xf32> -> vector<2x8x1xf32>
    %253 = vector.broadcast %252 : vector<2x8x1xf32> to vector<2x8x8xf32>
    %254 = arith.mulf %249, %253 : vector<2x8x8xf32>
    %255 = arith.truncf %254 : vector<2x8x8xf32> to vector<2x8x8xbf16>
    "tpu.trace_start"() <{level = 10 : i32, message = "bqk,bkd->bqd"}> : () -> ()
    %cst_88 = arith.constant dense<0.000000e+00> : vector<2x8x8xf32>
    %256 = tpu.matmul %255, %243, %cst_88 {dimension_numbers = #tpu.dot_dimension_numbers<[2], [1], [1], [2], [0, 0, 0, 1, 1, 2], [0], [0]>} : vector<2x8x8xbf16>, vector<2x8x8xbf16>, vector<2x8x8xf32> -> vector<2x8x8xf32>
    "tpu.trace_stop"() : () -> ()
    %257 = vector.extract_strided_slice %196 {offsets = [0, 0, 24], sizes = [2, 8, 8], strides = [1, 1, 1]} : vector<2x8x32xf32> to vector<2x8x8xf32>
    %258 = arith.truncf %257 : vector<2x8x8xf32> to vector<2x8x8xbf16>
    %259 = vector.extract_strided_slice %198 {offsets = [0, 0, 24], sizes = [2, 8, 8], strides = [1, 1, 1]} : vector<2x8x32xf32> to vector<2x8x8xf32>
    %260 = arith.truncf %259 : vector<2x8x8xf32> to vector<2x8x8xbf16>
    %261 = vector.extract_strided_slice %199 {offsets = [0, 0, 24], sizes = [2, 8, 8], strides = [1, 1, 1]} : vector<2x8x32xf32> to vector<2x8x8xf32>
    %262 = arith.truncf %261 : vector<2x8x8xf32> to vector<2x8x8xbf16>
    "tpu.trace_start"() <{level = 10 : i32, message = "bqd,bkd->bqk"}> : () -> ()
    %cst_89 = arith.constant dense<0.000000e+00> : vector<2x8x8xf32>
    %263 = tpu.matmul %258, %260, %cst_89 {dimension_numbers = #tpu.dot_dimension_numbers<[2], [2], [1], [1], [0, 0, 0, 1, 1, 1], [0], [0]>} : vector<2x8x8xbf16>, vector<2x8x8xbf16>, vector<2x8x8xf32> -> vector<2x8x8xf32>
    "tpu.trace_stop"() : () -> ()
    %cst_90 = arith.constant dense<0xFF800000> : vector<2x8xf32>
    %264 = vector.multi_reduction <maximumf>, %263, %cst_90 [2] : vector<2x8x8xf32> to vector<2x8xf32>
    %265 = vector.shape_cast %264 : vector<2x8xf32> to vector<2x8x1xf32>
    %266 = vector.broadcast %265 : vector<2x8x1xf32> to vector<2x8x8xf32>
    %267 = arith.subf %263, %266 : vector<2x8x8xf32>
    %268 = math.exp %267 : vector<2x8x8xf32>
    %cst_91 = arith.constant dense<0.000000e+00> : vector<2x8xf32>
    %269 = vector.multi_reduction <add>, %268, %cst_91 [2] : vector<2x8x8xf32> to vector<2x8xf32>
    %270 = vector.shape_cast %269 : vector<2x8xf32> to vector<2x8x1xf32>
    %271 = tpu.reciprocal %270 {approx = true} : vector<2x8x1xf32> -> vector<2x8x1xf32>
    %272 = vector.broadcast %271 : vector<2x8x1xf32> to vector<2x8x8xf32>
    %273 = arith.mulf %268, %272 : vector<2x8x8xf32>
    %274 = arith.truncf %273 : vector<2x8x8xf32> to vector<2x8x8xbf16>
    "tpu.trace_start"() <{level = 10 : i32, message = "bqk,bkd->bqd"}> : () -> ()
    %cst_92 = arith.constant dense<0.000000e+00> : vector<2x8x8xf32>
    %275 = tpu.matmul %274, %262, %cst_92 {dimension_numbers = #tpu.dot_dimension_numbers<[2], [1], [1], [2], [0, 0, 0, 1, 1, 2], [0], [0]>} : vector<2x8x8xbf16>, vector<2x8x8xbf16>, vector<2x8x8xf32> -> vector<2x8x8xf32>
    "tpu.trace_stop"() : () -> ()
    %276 = tpu.concatenate %218, %237, %256, %275 in 2 : vector<2x8x8xf32>, vector<2x8x8xf32>, vector<2x8x8xf32>, vector<2x8x8xf32> -> vector<2x8x32xf32>
    %277 = vector.shape_cast %276 : vector<2x8x32xf32> to vector<16x32xf32>
    %278 = arith.truncf %277 : vector<16x32xf32> to vector<16x32xbf16>
    %c1_93 = arith.constant 1 : index
    %c0_94 = arith.constant 0 : index
    %c0_95 = arith.constant 0 : index
    %279 = vector.load %arg4[%c1_93, %c0_94, %c0_95] : memref<2x32x32xbf16, #tpu.memory_space<vmem>>, vector<1x32x32xbf16>
    %280 = vector.shape_cast %279 : vector<1x32x32xbf16> to vector<32x32xbf16>
    %cst_96 = arith.constant dense<0.000000e+00> : vector<16x32xf32>
    %281 = tpu.matmul %278, %280, %cst_96 {dimension_numbers = #tpu.dot_dimension_numbers<[1], [0], [0], [1], [0, 0, 1, 1], [], []>} : vector<16x32xbf16>, vector<32x32xbf16>, vector<16x32xf32> -> vector<16x32xf32>
    %c1_97 = arith.constant 1 : index
    %c0_98 = arith.constant 0 : index
    %c0_99 = arith.constant 0 : index
    %282 = vector.load %arg5[%c1_97, %c0_98, %c0_99] : memref<2x1x32xf32, #tpu.memory_space<vmem>>, vector<1x1x32xf32>
    %283 = vector.shape_cast %282 : vector<1x1x32xf32> to vector<1x32xf32>
    %284 = vector.broadcast %283 : vector<1x32xf32> to vector<16x32xf32>
    %285 = arith.addf %281, %284 : vector<16x32xf32>
    %286 = arith.addf %177, %285 : vector<16x32xf32>
    %c1_100 = arith.constant 1 : index
    %c0_101 = arith.constant 0 : index
    %c0_102 = arith.constant 0 : index
    %287 = vector.load %arg6[%c1_100, %c0_101, %c0_102] : memref<2x1x32xf32, #tpu.memory_space<vmem>>, vector<1x1x32xf32>
    %288 = vector.shape_cast %287 : vector<1x1x32xf32> to vector<1x32xf32>
    %c1_103 = arith.constant 1 : index
    %c0_104 = arith.constant 0 : index
    %c0_105 = arith.constant 0 : index
    %289 = vector.load %arg7[%c1_103, %c0_104, %c0_105] : memref<2x1x32xf32, #tpu.memory_space<vmem>>, vector<1x1x32xf32>
    %290 = vector.shape_cast %289 : vector<1x1x32xf32> to vector<1x32xf32>
    %cst_106 = arith.constant dense<0.000000e+00> : vector<16xf32>
    %291 = vector.multi_reduction <add>, %286, %cst_106 [1] : vector<16x32xf32> to vector<16xf32>
    %292 = vector.shape_cast %291 : vector<16xf32> to vector<16x1xf32>
    %cst_107 = arith.constant 3.200000e+01 : f32
    %293 = vector.broadcast %cst_107 : f32 to vector<16x1xf32>
    %294 = arith.divf %292, %293 : vector<16x1xf32>
    %295 = vector.broadcast %294 : vector<16x1xf32> to vector<16x32xf32>
    %296 = arith.subf %286, %295 : vector<16x32xf32>
    %297 = arith.mulf %296, %296 : vector<16x32xf32>
    %cst_108 = arith.constant dense<0.000000e+00> : vector<16xf32>
    %298 = vector.multi_reduction <add>, %297, %cst_108 [1] : vector<16x32xf32> to vector<16xf32>
    %299 = vector.shape_cast %298 : vector<16xf32> to vector<16x1xf32>
    %cst_109 = arith.constant 3.200000e+01 : f32
    %300 = vector.broadcast %cst_109 : f32 to vector<16x1xf32>
    %301 = arith.divf %299, %300 : vector<16x1xf32>
    %cst_110 = arith.constant 9.99999974E-6 : f32
    %302 = vector.broadcast %cst_110 : f32 to vector<16x1xf32>
    %303 = arith.addf %301, %302 : vector<16x1xf32>
    %304 = math.rsqrt %303 : vector<16x1xf32>
    %305 = vector.broadcast %304 : vector<16x1xf32> to vector<16x32xf32>
    %306 = arith.mulf %296, %305 : vector<16x32xf32>
    %307 = vector.broadcast %288 : vector<1x32xf32> to vector<16x32xf32>
    %308 = arith.mulf %306, %307 : vector<16x32xf32>
    %309 = vector.broadcast %290 : vector<1x32xf32> to vector<16x32xf32>
    %310 = arith.addf %308, %309 : vector<16x32xf32>
    %311 = arith.truncf %310 : vector<16x32xf32> to vector<16x32xbf16>
    %c1_111 = arith.constant 1 : index
    %c0_112 = arith.constant 0 : index
    %c0_113 = arith.constant 0 : index
    %312 = vector.load %arg8[%c1_111, %c0_112, %c0_113] : memref<2x32x64xbf16, #tpu.memory_space<vmem>>, vector<1x32x64xbf16>
    %313 = vector.shape_cast %312 : vector<1x32x64xbf16> to vector<32x64xbf16>
    %cst_114 = arith.constant dense<0.000000e+00> : vector<16x64xf32>
    %314 = tpu.matmul %311, %313, %cst_114 {dimension_numbers = #tpu.dot_dimension_numbers<[1], [0], [0], [1], [0, 0, 1, 1], [], []>} : vector<16x32xbf16>, vector<32x64xbf16>, vector<16x64xf32> -> vector<16x64xf32>
    %c1_115 = arith.constant 1 : index
    %c0_116 = arith.constant 0 : index
    %c0_117 = arith.constant 0 : index
    %315 = vector.load %arg9[%c1_115, %c0_116, %c0_117] : memref<2x1x64xf32, #tpu.memory_space<vmem>>, vector<1x1x64xf32>
    %316 = vector.shape_cast %315 : vector<1x1x64xf32> to vector<1x64xf32>
    %317 = vector.broadcast %316 : vector<1x64xf32> to vector<16x64xf32>
    %318 = arith.addf %314, %317 : vector<16x64xf32>
    %cst_118 = arith.constant 0.000000e+00 : f32
    %319 = vector.broadcast %cst_118 : f32 to vector<16x64xf32>
    %320 = arith.maximumf %318, %319 : vector<16x64xf32>
    %321 = arith.truncf %320 : vector<16x64xf32> to vector<16x64xbf16>
    %c1_119 = arith.constant 1 : index
    %c0_120 = arith.constant 0 : index
    %c0_121 = arith.constant 0 : index
    %322 = vector.load %arg10[%c1_119, %c0_120, %c0_121] : memref<2x64x32xbf16, #tpu.memory_space<vmem>>, vector<1x64x32xbf16>
    %323 = vector.shape_cast %322 : vector<1x64x32xbf16> to vector<64x32xbf16>
    %cst_122 = arith.constant dense<0.000000e+00> : vector<16x32xf32>
    %324 = tpu.matmul %321, %323, %cst_122 {dimension_numbers = #tpu.dot_dimension_numbers<[1], [0], [0], [1], [0, 0, 1, 1], [], []>} : vector<16x64xbf16>, vector<64x32xbf16>, vector<16x32xf32> -> vector<16x32xf32>
    %c1_123 = arith.constant 1 : index
    %c0_124 = arith.constant 0 : index
    %c0_125 = arith.constant 0 : index
    %325 = vector.load %arg11[%c1_123, %c0_124, %c0_125] : memref<2x1x32xf32, #tpu.memory_space<vmem>>, vector<1x1x32xf32>
    %326 = vector.shape_cast %325 : vector<1x1x32xf32> to vector<1x32xf32>
    %327 = vector.broadcast %326 : vector<1x32xf32> to vector<16x32xf32>
    %328 = arith.addf %324, %327 : vector<16x32xf32>
    %329 = arith.addf %310, %328 : vector<16x32xf32>
    %c1_126 = arith.constant 1 : index
    %c0_127 = arith.constant 0 : index
    %c0_128 = arith.constant 0 : index
    %330 = vector.load %arg12[%c1_126, %c0_127, %c0_128] : memref<2x1x32xf32, #tpu.memory_space<vmem>>, vector<1x1x32xf32>
    %331 = vector.shape_cast %330 : vector<1x1x32xf32> to vector<1x32xf32>
    %c1_129 = arith.constant 1 : index
    %c0_130 = arith.constant 0 : index
    %c0_131 = arith.constant 0 : index
    %332 = vector.load %arg13[%c1_129, %c0_130, %c0_131] : memref<2x1x32xf32, #tpu.memory_space<vmem>>, vector<1x1x32xf32>
    %333 = vector.shape_cast %332 : vector<1x1x32xf32> to vector<1x32xf32>
    %cst_132 = arith.constant dense<0.000000e+00> : vector<16xf32>
    %334 = vector.multi_reduction <add>, %329, %cst_132 [1] : vector<16x32xf32> to vector<16xf32>
    %335 = vector.shape_cast %334 : vector<16xf32> to vector<16x1xf32>
    %cst_133 = arith.constant 3.200000e+01 : f32
    %336 = vector.broadcast %cst_133 : f32 to vector<16x1xf32>
    %337 = arith.divf %335, %336 : vector<16x1xf32>
    %338 = vector.broadcast %337 : vector<16x1xf32> to vector<16x32xf32>
    %339 = arith.subf %329, %338 : vector<16x32xf32>
    %340 = arith.mulf %339, %339 : vector<16x32xf32>
    %cst_134 = arith.constant dense<0.000000e+00> : vector<16xf32>
    %341 = vector.multi_reduction <add>, %340, %cst_134 [1] : vector<16x32xf32> to vector<16xf32>
    %342 = vector.shape_cast %341 : vector<16xf32> to vector<16x1xf32>
    %cst_135 = arith.constant 3.200000e+01 : f32
    %343 = vector.broadcast %cst_135 : f32 to vector<16x1xf32>
    %344 = arith.divf %342, %343 : vector<16x1xf32>
    %cst_136 = arith.constant 9.99999974E-6 : f32
    %345 = vector.broadcast %cst_136 : f32 to vector<16x1xf32>
    %346 = arith.addf %344, %345 : vector<16x1xf32>
    %347 = math.rsqrt %346 : vector<16x1xf32>
    %348 = vector.broadcast %347 : vector<16x1xf32> to vector<16x32xf32>
    %349 = arith.mulf %339, %348 : vector<16x32xf32>
    %350 = vector.broadcast %331 : vector<1x32xf32> to vector<16x32xf32>
    %351 = arith.mulf %349, %350 : vector<16x32xf32>
    %352 = vector.broadcast %333 : vector<1x32xf32> to vector<16x32xf32>
    %353 = arith.addf %351, %352 : vector<16x32xf32>
    %c0_137 = arith.constant 0 : index
    %c0_138 = arith.constant 0 : index
    %354 = vector.load %arg14[%c0_137, %c0_138] : memref<16x32xf32, #tpu.memory_space<vmem>>, vector<16x32xf32>
    tpu.vector_store %arg14[%c0_137, %c0_138], %353 {strides = array<i32>} : memref<16x32xf32, #tpu.memory_space<vmem>>, vector<16x32xf32>,
    return
  }
}

</mosaic_0001>

<bundles_post_ra>
// kernel: tpu_custom_call.1
= control target key start
LH: loop header
LB: loop body
LE: loop exit
PB: predicated region body
PF: predicated region fallthrough
CT: control target
= control target key end

     0   :  { %19 = vsyncpa [#allocation3], 0  ;;  %s4175_s0 = inlined_call_operand.hbm [shape: f32[16,32], index: 0, kind: input, shape index: {}]   ;;  %s4176_s1 = inlined_call_operand.hbm [shape: f32[16,32], index: 1, kind: input, shape index: {}]   ;;  %s4177_s2 = inlined_call_operand.vmem [shape: bf16[2,32,96], index: 2, kind: input, shape index: {}]   ;;  %s4178_s3 = inlined_call_operand.vmem [shape: f32[2,1,96], index: 3, kind: input, shape index: {}]   ;;  %s4179_s4 = inlined_call_operand.vmem [shape: bf16[2,32,32], index: 4, kind: input, shape index: {}]   ;;  %s4180_s5 = inlined_call_operand.vmem [shape: f32[2,1,32], index: 5, kind: input, shape index: {}]   ;;  %s4181_s6 = inlined_call_operand.vmem [shape: f32[2,1,32], index: 6, kind: input, shape index: {}]   ;;  %s4182_s7 = inlined_call_operand.vmem [shape: f32[2,1,32], index: 7, kind: input, shape index: {}]   ;;  %s4183_s8 = inlined_call_operand.vmem [shape: bf16[2,32,64], index: 8, kind: input, shape index: {}]   ;;  %s4184_s9 = inlined_call_operand.vmem [shape: f32[2,1,64], index: 9, kind: input, shape index: {}]   ;;  %s4185_s10 = inlined_call_operand.vmem [shape: bf16[2,64,32], index: 10, kind: input, shape index: {}]   ;;  %s4186_s11 = inlined_call_operand.vmem [shape: f32[2,1,32], index: 11, kind: input, shape index: {}]   ;;  %s4187_s12 = inlined_call_operand.vmem [shape: f32[2,1,32], index: 12, kind: input, shape index: {}]   ;;  %s4188_s13 = inlined_call_operand.vmem [shape: f32[2,1,32], index: 13, kind: input, shape index: {}]   ;;  %s4189_s14 = inlined_call_operand.hbm [shape: f32[16,32], index: 14, kind: output, shape index: {}]  }
   0x1   :  { %20 = vsyncpa [#allocation6], 0 }
   0x2   :  { %21 = vsyncpa [#allocation4], 0  ;;  %s3515_s29 = smov [#allocation2]  }
   0x3   :  { %s27_s30 = sshll.u32 %s3515_s29, 4  ;;  %s28_s30 = int_to_ptr.vmem [resolvable:$true] %s27_s30 }
   0x4   :  { %s3457_s15 = scalar_lea.vmem %s28_s30, 256  ;;  %p3462_p1 = scmp.lt.s32.totalorder %s28_s30, %s28_s30 }
   0x5   :  { %p3458_p0 = scmp.ne.s32.totalorder %s28_s30, %s3457_s15  ;;  %p3463_p2 = scmp.lt.s32.totalorder %s3457_s15, %s3457_s15 }
   0x7   :  { %p3464_p3 = por %p3463_p2, %p3462_p1 }
   0x9   :  { %p3465_p4 = pnand %p3464_p3, %p3458_p0 }
   0xb   :  { %3468 = shalt.err (!%p3465_p4)
}
   0xc   :  { %s4190_s16 = smov 128   ;;  %s3517_s17 = smov 8  }
   0xd   :  { %33 = dma.hbm_to_vmem [thread:$0]  %s4175_s0, 256, %s28_s30, [#allocation3], %s4190_s16, %s4190_s16, %s3517_s17  }
   0xe   :  { %s3518_s20 = smov [#allocation5]  }
   0xf   :  { %s39_s21 = sshll.u32 %s3518_s20, 4  ;;  %s40_s21 = int_to_ptr.vmem [resolvable:$true] %s39_s21 }
  0x10   :  { %s3477_s22 = scalar_lea.vmem %s40_s21, 256  ;;  %p3482_p6 = scmp.lt.s32.totalorder %s40_s21, %s40_s21 }
  0x11   :  { %p3478_p5 = scmp.ne.s32.totalorder %s40_s21, %s3477_s22  ;;  %p3483_p7 = scmp.lt.s32.totalorder %s3477_s22, %s3477_s22 }
  0x13   :  { %p3484_p8 = por %p3483_p7, %p3482_p6 }
  0x15   :  { %p3485_p9 = pnand %p3484_p8, %p3478_p5 }
  0x17   :  { %3488 = shalt.err (!%p3485_p9)
}
  0x18   :  { %45 = dma.hbm_to_vmem [thread:$0]  %s4176_s1, 256, %s40_s21, [#allocation6], %s4190_s16, %s4190_s16, %s3517_s17  }
  0x19   :  { %3509 = dma.done.wait [#allocation3], 256  }
  0x1a   :  { %3510 = vsyncadd [#allocation3], 4294967040 }
  0x1b   :  { %3511 = dma.done.wait [#allocation6], 256  }
  0x1c   :  { %3512 = vsyncadd [#allocation6], 4294967040  ;;  %v3519_v0 = vmov 0.0   ;;  %vm3520_vm0 = vmmov 0   ;;  %v3347_v1 = vld [vmem:[%s4177_s2 + $0x8] sm:$0xff]   ;;  %v3348_v2 = vld [vmem:[%s4177_s2] sm:$0xff]  }
  0x1d   :  { %3020 = vmatprep.subr.bf16.mxu1 %v3519_v0  ;;  %3024 = vmatprep.mubr.msk.bf16.mxu1 %vm3520_vm0, %v3519_v0  ;;  %v3631_v3 = vld [vmem:[#allocation2] sm:$0xff]  ;;  %v3633_v4 = vld [vmem:[#allocation2 + $0x8] sm:$0xff]  ;;  %v79_v5 = vld [vmem:[#allocation5] sm:$0xff]  ;;  %s3521_s27 = smov 64   ;;  %vm107_vm1 = vcmask 261120   ;;  %s3522_s30 = smov 96  }
  0x1e   :  { %3036 = vmatprep.subr.bf16.mxu0 %v3519_v0  ;;  %3038 = vmatprep.mubr.msk.bf16.mxu0 %vm3520_vm0, %v3519_v0  ;;  %v80_v6 = vld [vmem:[#allocation5 + $0x8] sm:$0xff]  ;;  %v86_v7 = vadd.f32 %v79_v5, %v3631_v3  ;;  %v152_v12 = vpack.c.bf16 %v3633_v4, %v3631_v3  ;;  %v2816_v13 = vld [vmem:[%s4178_s3] ss:$0 sm:$0xff]  ;;  %vm213_vm2 = vcmask 64512   ;;  %s3523_s15 = smov 88   ;;  %s3524_s18 = smov 120  }
  0x1f   :  { %3021 = vmatpush3.bf16.msra.mxu1 %v3347_v1  ;;  %155 = vrot.lane.b32.xlu0 %v3347_v1, %s3521_s27  ;;  %v87_v8 = vadd.f32 %v80_v6, %v3633_v4  ;;  %vm336_vm3 = vcmask 1043456   ;;  %s3525_s19 = smov 80   ;;  %s3526_s20 = smov 112   ;;  %vm1114_vm4 = vcmask 130048   ;;  %vm1117_vm5 = vcmask 195584  }
  0x20   :  { %3022 = vmatprep.subr.bf16.mxu1 %v3519_v0  ;;  %s3527_s21 = smov 72   ;;  %s3528_s22 = smov 104   ;;  %vm1345_vm6 = vcmask 523264  }
  0x21   :  { %v88_v9 = vpack.c.bf16 %v87_v8, %v86_v7  ;;  %s3529_s23 = smov 16   ;;  %s3530_s26 = smov 24  }
  0x23   :  { %3023 = vmatpush3.bf16.msra.mxu1 %v3348_v2  ;;  %153 = vrot.lane.b32.xlu0 %v3348_v2, %s3521_s27 }
  0x24   :  { %3028 = vmatprep.subr.bf16.mxu1 %v3519_v0 }
  0x26   :  { %3025 = vmatmul.mubr.msk.bf16.vlgmr.msra.gmra.mxu1 %vm107_vm1, %v88_v9 }
  0x27   :  { %3032 = vmatprep.mubr.msk.bf16.mxu1 %vm3520_vm0, %v3519_v0 }
  0x91   :  { %v156_v10 = vpop.permute.xlu0 %155 }
  0x92   :  { %3029 = vmatpush3.bf16.msra.mxu1 %v156_v10 }
  0x93   :  { %3030 = vmatprep.subr.bf16.mxu1 %v3519_v0 }
  0x95   :  { %v154_v11 = vpop.permute.xlu0 %153 }
  0x96   :  { %3031 = vmatpush3.bf16.msra.mxu1 %v154_v11 }
  0x97   :  { %3042 = vmatprep.subr.bf16.mxu1 %v3519_v0 }
  0x99   :  { %3033 = vmatmul.mubr.msk.bf16.vlgmr.msra.gmra.mxu1 %vm107_vm1, %v152_v12 }
  0x9a   :  { %3044 = vmatprep.mubr.msk.bf16.mxu1 %vm3520_vm0, %v3519_v0 }
  0xe6   :  { %v145_v14 = vpop.f32.mrf.mxu1 }
  0xe7   :  { %v146_v15 = vadd.f32 %v2816_v13, %v145_v14 }
  0xe8   :  { %v3026_v16 = vpop.f32.mrf.mxu1 }
  0xe9   :  { %v3654_v17 = vpack.c.bf16 %v146_v15, %v146_v15 }
  0xea   :  { %v148_v18 = vpop.f32.mrf.mxu1 }
  0xeb   :  { %v149_v19 = vadd.f32 %v2816_v13, %v148_v18  ;;  %211 = vrot.lane.b32.xlu1 %v3654_v17, %s3522_s30 }
  0xec   :  { %v3027_v20 = vpop.f32.mrf.mxu1 }
  0xed   :  { %v3658_v21 = vpack.c.bf16 %v149_v19, %v149_v19 }
  0xef   :  { %261 = vrot.lane.b32.xlu1 %v3658_v21, %s3522_s30 }
 0x159   :  { %v199_v22 = vpop.f32.mrf.mxu1 }
 0x15b   :  { %v3034_v23 = vpop.f32.mrf.mxu1 }
 0x15d   :  { %v212_v24 = vpop.permute.xlu1 %211  ;;  %v202_v25 = vpop.f32.mrf.mxu1 }
 0x15e   :  { %v218_v26 = vsel %vm213_vm2, %v212_v24, 0 }
 0x15f   :  { %3037 = vmatpush3.bf16.xpose.msra.mxu0 %v218_v26  ;;  %v3035_v27 = vpop.f32.mrf.mxu1 }
 0x160   :  { %3048 = vmatprep.subr.bf16.mxu0 %v3519_v0 }
 0x161   :  { %v262_v28 = vpop.permute.xlu1 %261 }
 0x162   :  { %v267_v29 = vsel %vm213_vm2, %v262_v28, 0 }
 0x163   :  { %3043 = vmatpush3.bf16.xpose.msra.mxu1 %v267_v29 }
 0x164   :  { %3054 = vmatprep.subr.bf16.mxu1 %v3519_v0 }
 0x166   :  { %3039 = vmatmul.mubr.msk.bf16.vlgmr.msra.gmra.mxu0 %vm213_vm2, %v3654_v17 }
 0x167   :  { %3050 = vmatprep.mubr.msk.bf16.mxu0 %vm3520_vm0, %v3519_v0 }
 0x16a   :  { %3045 = vmatmul.mubr.msk.bf16.vlgmr.msra.gmra.mxu1 %vm213_vm2, %v3658_v21 }
 0x16b   :  { %3056 = vmatprep.mubr.msk.bf16.mxu1 %vm3520_vm0, %v3519_v0 }
 0x226   :  { %v254_v30 = vpop.f32.mrf.mxu0 }
 0x227   :  { %v309_v31 = vsel %vm213_vm2, %v254_v30, -inf }
 0x228   :  { %310 = vmax.xlane.f32.xlu0 %v309_v31  ;;  %v3040_v32 = vpop.f32.mrf.mxu0 }
 0x22a   :  { %v257_v33 = vpop.f32.mrf.mxu0  ;;  %v303_v34 = vpop.f32.mrf.mxu1 }
 0x22b   :  { %v312_v35 = vsel %vm213_vm2, %v303_v34, -inf }
 0x22c   :  { %v3041_v36 = vpop.f32.mrf.mxu0  ;;  %313 = vmax.xlane.f32.xlu1 %v312_v35  ;;  %v3046_v37 = vpop.f32.mrf.mxu1 }
 0x22e   :  { %v306_v38 = vpop.f32.mrf.mxu1 }
 0x230   :  { %v3047_v39 = vpop.f32.mrf.mxu1 }
 0x23d   :  { %159 = vrot.lane.b32.xlu1 %v2816_v13, %s3521_s27 }
 0x241   :  { %478 = vrot.lane.b32.xlu1 %v3658_v21, %s3523_s15 }
 0x245   :  { %426 = vrot.lane.b32.xlu1 %v3654_v17, %s3524_s18 }
 0x2b1   :  { %v311_v40 = vpop.xlane.xlu0 %310 }
 0x2b2   :  { %v315_v41 = vsub.f32 %v254_v30, %v311_v40 }
 0x2b4   :  { %v317_v42 = vmul.f32 1.442695, %v315_v41 }
 0x2b5   :  { %v314_v43 = vpop.xlane.xlu1 %313 }
 0x2b6   :  { %3367 = vpow2.f32 %v317_v42  ;;  %v316_v44 = vsub.f32 %v303_v34, %v314_v43 }
 0x2b8   :  { %v319_v45 = vmul.f32 1.442695, %v316_v44 }
 0x2b9   :  { %v160_v46 = vpop.permute.xlu1 %159 }
 0x2ba   :  { %3369 = vpow2.f32 %v319_v45  ;;  %v200_v47 = vadd.f32 %v199_v22, %v160_v46  ;;  %v203_v48 = vadd.f32 %v202_v25, %v160_v46 }
 0x2bc   :  { %v3681_v49 = vpack.c.bf16 %v200_v47, %v200_v47  ;;  %v3683_v50 = vpack.c.bf16 %v203_v48, %v203_v48 }
 0x2bd   :  { %v479_v5 = vpop.permute.xlu1 %478 }
 0x2be   :  { %v338_v51 = vsel %vm336_vm3, %v3681_v49, 0  ;;  %v384_v52 = vsel %vm336_vm3, %v3683_v50, 0  ;;  %v484_v7 = vsel %vm213_vm2, %v479_v5, 0 }
 0x2bf   :  { %3049 = vmatpush3.bf16.msra.mxu0 %v338_v51  ;;  %3055 = vmatpush3.bf16.msra.mxu1 %v384_v52 }
 0x2c0   :  { %3060 = vmatprep.subr.bf16.mxu0 %v3519_v0  ;;  %3066 = vmatprep.subr.bf16.mxu1 %v3519_v0 }
 0x2c1   :  { %v427_v8 = vpop.permute.xlu1 %426 }
 0x2c3   :  { %v3368_v53 = vpop.eup %3367 }
 0x2c4   :  { %v321_v54 = vsel %vm213_vm2, %v3368_v53, 0.0 }
 0x2c5   :  { %322 = vadd.xlane.f32.xlu0 %v321_v54 }
 0x2c7   :  { %v3370_v55 = vpop.eup %3369 }
 0x2c8   :  { %v324_v56 = vsel %vm213_vm2, %v3370_v55, 0.0 }
 0x2c9   :  { %325 = vadd.xlane.f32.xlu0 %v324_v56 }
 0x2df   :  { %428 = vrot.lane.b32.xlu0 %v3654_v17, %s3523_s15 }
 0x2e3   :  { %476 = vrot.lane.b32.xlu0 %v3658_v21, %s3524_s18 }
 0x34e   :  { %v323_v57 = vpop.xlane.xlu0 %322 }
 0x34f   :  { %3371 = vrcp.f32 %v323_v57 }
 0x352   :  { %v326_v58 = vpop.xlane.xlu0 %325 }
 0x353   :  { %3373 = vrcp.f32 %v326_v58 }
 0x356   :  { %v429_v61 = vpop.permute.xlu0 %428 }
 0x357   :  { %v434_v1 = vsel %vm213_vm2, %v429_v61, 0 }
 0x35a   :  { %v477_v9 = vpop.permute.xlu0 %476 }
 0x35c   :  { %v3372_v59 = vpop.eup %3371 }
 0x35d   :  { %v329_v60 = vmul.f32 %v3372_v59, %v3368_v53 }
 0x35f   :  { %v331_v62 = vpack.c.bf16 %v329_v60, %v329_v60 }
 0x360   :  { %v3374_v63 = vpop.eup %3373 }
 0x361   :  { %3051 = vmatmul.mubr.msk.bf16.vlgmr.msra.gmra.mxu0 %vm213_vm2, %v331_v62  ;;  %v330_v2 = vmul.f32 %v3374_v63, %v3370_v55 }
 0x362   :  { %3061 = vmatpush3.bf16.xpose.msra.mxu0 %v434_v1  ;;  %3062 = vmatprep.mubr.msk.bf16.mxu0 %vm3520_vm0, %v3519_v0 }
 0x363   :  { %v332_v6 = vpack.c.bf16 %v330_v2, %v330_v2  ;;  %3072 = vmatprep.subr.bf16.mxu0 %v3519_v0 }
 0x365   :  { %3057 = vmatmul.mubr.msk.bf16.vlgmr.msra.gmra.mxu1 %vm213_vm2, %v332_v6 }
 0x366   :  { %3067 = vmatpush3.bf16.xpose.msra.mxu1 %v484_v7  ;;  %3068 = vmatprep.mubr.msk.bf16.mxu1 %vm3520_vm0, %v3519_v0 }
 0x367   :  { %3078 = vmatprep.subr.bf16.mxu1 %v3519_v0 }
 0x369   :  { %3063 = vmatmul.mubr.msk.bf16.vlgmr.msra.gmra.mxu0 %vm213_vm2, %v427_v8 }
 0x36a   :  { %3074 = vmatprep.mubr.msk.bf16.mxu0 %vm3520_vm0, %v3519_v0 }
 0x36d   :  { %3069 = vmatmul.mubr.msk.bf16.vlgmr.msra.gmra.mxu1 %vm213_vm2, %v477_v9 }
 0x36e   :  { %3080 = vmatprep.mubr.msk.bf16.mxu1 %vm3520_vm0, %v3519_v0 }
 0x421   :  { %v3713_v10 = vpop.f32.mrf.mxu0 }
 0x423   :  { %v3052_v11 = vpop.f32.mrf.mxu0 }
 0x425   :  { %v377_v12 = vpop.f32.mrf.mxu0  ;;  %v3715_v13 = vpop.f32.mrf.mxu1 }
 0x427   :  { %v3053_v14 = vpop.f32.mrf.mxu0  ;;  %v3058_v15 = vpop.f32.mrf.mxu1 }
 0x429   :  { %v423_v16 = vpop.f32.mrf.mxu1  ;;  %v470_v18 = vpop.f32.mrf.mxu0 }
 0x42a   :  { %v526_v19 = vsel %vm213_vm2, %v470_v18, -inf }
 0x42b   :  { %527 = vmax.xlane.f32.xlu1 %v526_v19  ;;  %v3059_v20 = vpop.f32.mrf.mxu1  ;;  %v3064_v22 = vpop.f32.mrf.mxu0 }
 0x42d   :  { %v473_v23 = vpop.f32.mrf.mxu0  ;;  %v520_v24 = vpop.f32.mrf.mxu1 }
 0x42e   :  { %v529_v25 = vsel %vm213_vm2, %v520_v24, -inf }
 0x42f   :  { %v3065_v26 = vpop.f32.mrf.mxu0  ;;  %530 = vmax.xlane.f32.xlu0 %v529_v25  ;;  %v3070_v27 = vpop.f32.mrf.mxu1 }
 0x431   :  { %v523_v28 = vpop.f32.mrf.mxu1 }
 0x433   :  { %v3071_v29 = vpop.f32.mrf.mxu1 }
 0x43c   :  { %600 = vrot.lane.b32.xlu1 %v3683_v50, %s3524_s18 }
 0x445   :  { %551 = vrot.lane.b32.xlu0 %v3681_v49, %s3524_s18 }
 0x4b4   :  { %v528_v30 = vpop.xlane.xlu1 %527 }
 0x4b5   :  { %v532_v31 = vsub.f32 %v470_v18, %v528_v30 }
 0x4b7   :  { %v534_v32 = vmul.f32 1.442695, %v532_v31 }
 0x4b8   :  { %v601_v33 = vpop.permute.xlu1 %600  ;;  %v531_v34 = vpop.xlane.xlu0 %530 }
 0x4b9   :  { %3375 = vpow2.f32 %v534_v32  ;;  %v606_v35 = vsel %vm336_vm3, %v601_v33, 0  ;;  %v533_v36 = vsub.f32 %v520_v24, %v531_v34 }
 0x4ba   :  { %3079 = vmatpush3.bf16.msra.mxu1 %v606_v35 }
 0x4bb   :  { %v536_v37 = vmul.f32 1.442695, %v533_v36  ;;  %3090 = vmatprep.subr.bf16.mxu1 %v3519_v0 }
 0x4bc   :  { %v552_v38 = vpop.permute.xlu0 %551 }
 0x4bd   :  { %3377 = vpow2.f32 %v536_v37  ;;  %v557_v39 = vsel %vm336_vm3, %v552_v38, 0 }
 0x4be   :  { %3073 = vmatpush3.bf16.msra.mxu0 %v557_v39 }
 0x4bf   :  { %3084 = vmatprep.subr.bf16.mxu0 %v3519_v0 }
 0x4c6   :  { %v3376_v40 = vpop.eup %3375 }
 0x4c7   :  { %v538_v41 = vsel %vm213_vm2, %v3376_v40, 0.0 }
 0x4c8   :  { %539 = vadd.xlane.f32.xlu0 %v538_v41 }
 0x4ca   :  { %v3378_v42 = vpop.eup %3377 }
 0x4cb   :  { %v541_v43 = vsel %vm213_vm2, %v3378_v42, 0.0 }
 0x4cc   :  { %542 = vadd.xlane.f32.xlu1 %v541_v43 }
 0x4dd   :  { %650 = vrot.lane.b32.xlu1 %v3654_v17, %s3525_s19 }
 0x4de   :  { %700 = vrot.lane.b32.xlu0 %v3658_v21, %s3525_s19 }
 0x4e1   :  { %648 = vrot.lane.b32.xlu1 %v3654_v17, %s3526_s20 }
 0x4e2   :  { %698 = vrot.lane.b32.xlu0 %v3658_v21, %s3526_s20 }
 0x551   :  { %v540_v44 = vpop.xlane.xlu0 %539 }
 0x552   :  { %3379 = vrcp.f32 %v540_v44 }
 0x555   :  { %v543_v45 = vpop.xlane.xlu1 %542  ;;  %v701_v55 = vpop.permute.xlu0 %700 }
 0x556   :  { %3381 = vrcp.f32 %v543_v45  ;;  %v706_v57 = vsel %vm213_vm2, %v701_v55, 0 }
 0x559   :  { %v651_v48 = vpop.permute.xlu1 %650  ;;  %v699_v59 = vpop.permute.xlu0 %698 }
 0x55a   :  { %v656_v53 = vsel %vm213_vm2, %v651_v48, 0 }
 0x55d   :  { %v649_v58 = vpop.permute.xlu1 %648 }
 0x55f   :  { %v3380_v46 = vpop.eup %3379 }
 0x560   :  { %v546_v47 = vmul.f32 %v3380_v46, %v3376_v40 }
 0x562   :  { %v548_v51 = vpack.c.bf16 %v546_v47, %v546_v47 }
 0x563   :  { %v3382_v52 = vpop.eup %3381 }
 0x564   :  { %3075 = vmatmul.mubr.msk.bf16.vlgmr.msra.gmra.mxu0 %vm213_vm2, %v548_v51  ;;  %v547_v54 = vmul.f32 %v3382_v52, %v3378_v42 }
 0x565   :  { %3085 = vmatpush3.bf16.xpose.msra.mxu0 %v656_v53  ;;  %3086 = vmatprep.mubr.msk.bf16.mxu0 %vm3520_vm0, %v3519_v0 }
 0x566   :  { %v549_v56 = vpack.c.bf16 %v547_v54, %v547_v54  ;;  %3096 = vmatprep.subr.bf16.mxu0 %v3519_v0 }
 0x568   :  { %3081 = vmatmul.mubr.msk.bf16.vlgmr.msra.gmra.mxu1 %vm213_vm2, %v549_v56 }
 0x569   :  { %3091 = vmatpush3.bf16.xpose.msra.mxu1 %v706_v57  ;;  %3092 = vmatprep.mubr.msk.bf16.mxu1 %vm3520_vm0, %v3519_v0 }
 0x56a   :  { %3102 = vmatprep.subr.bf16.mxu1 %v3519_v0 }
 0x56c   :  { %3087 = vmatmul.mubr.msk.bf16.vlgmr.msra.gmra.mxu0 %vm213_vm2, %v649_v58 }
 0x56d   :  { %3098 = vmatprep.mubr.msk.bf16.mxu0 %vm3520_vm0, %v3519_v0 }
 0x570   :  { %3093 = vmatmul.mubr.msk.bf16.vlgmr.msra.gmra.mxu1 %vm213_vm2, %v699_v59 }
 0x571   :  { %3104 = vmatprep.mubr.msk.bf16.mxu1 %vm3520_vm0, %v3519_v0 }
 0x624   :  { %v3753_v60 = vpop.f32.mrf.mxu0 }
 0x626   :  { %v3076_v61 = vpop.f32.mrf.mxu0 }
 0x628   :  { %v596_v62 = vpop.f32.mrf.mxu0  ;;  %v3755_v63 = vpop.f32.mrf.mxu1 }
 0x629   :  { %v3317_v1 = vpack.i.bf16 %v3755_v63, %v3753_v60 }
 0x62a   :  { %v3077_v2 = vpop.f32.mrf.mxu0  ;;  %v3082_v5 = vpop.f32.mrf.mxu1 }
 0x62c   :  { %v645_v6 = vpop.f32.mrf.mxu1  ;;  %v692_v7 = vpop.f32.mrf.mxu0 }
 0x62d   :  { %v748_v8 = vsel %vm213_vm2, %v692_v7, -inf }
 0x62e   :  { %749 = vmax.xlane.f32.xlu1 %v748_v8  ;;  %v3083_v9 = vpop.f32.mrf.mxu1  ;;  %v3088_v11 = vpop.f32.mrf.mxu0 }
 0x630   :  { %v695_v12 = vpop.f32.mrf.mxu0  ;;  %v742_v14 = vpop.f32.mrf.mxu1 }
 0x631   :  { %v751_v15 = vsel %vm213_vm2, %v742_v14, -inf }
 0x632   :  { %v3089_v16 = vpop.f32.mrf.mxu0  ;;  %752 = vmax.xlane.f32.xlu0 %v751_v15  ;;  %v3094_v18 = vpop.f32.mrf.mxu1 }
 0x634   :  { %v745_v19 = vpop.f32.mrf.mxu1 }
 0x636   :  { %v3095_v20 = vpop.f32.mrf.mxu1 }
 0x63f   :  { %820 = vrot.lane.b32.xlu1 %v3683_v50, %s3526_s20 }
 0x648   :  { %772 = vrot.lane.b32.xlu0 %v3681_v49, %s3526_s20 }
 0x6b7   :  { %v750_v22 = vpop.xlane.xlu1 %749 }
 0x6b8   :  { %v754_v23 = vsub.f32 %v692_v7, %v750_v22 }
 0x6ba   :  { %v756_v24 = vmul.f32 1.442695, %v754_v23 }
 0x6bb   :  { %v821_v25 = vpop.permute.xlu1 %820  ;;  %v753_v26 = vpop.xlane.xlu0 %752 }
 0x6bc   :  { %3383 = vpow2.f32 %v756_v24  ;;  %v826_v27 = vsel %vm336_vm3, %v821_v25, 0  ;;  %v755_v28 = vsub.f32 %v742_v14, %v753_v26 }
 0x6bd   :  { %3103 = vmatpush3.bf16.msra.mxu1 %v826_v27 }
 0x6be   :  { %v758_v29 = vmul.f32 1.442695, %v755_v28  ;;  %3114 = vmatprep.subr.bf16.mxu1 %v3519_v0 }
 0x6bf   :  { %v773_v30 = vpop.permute.xlu0 %772 }
 0x6c0   :  { %3385 = vpow2.f32 %v758_v29  ;;  %v778_v31 = vsel %vm336_vm3, %v773_v30, 0 }
 0x6c1   :  { %3097 = vmatpush3.bf16.msra.mxu0 %v778_v31 }
 0x6c2   :  { %3108 = vmatprep.subr.bf16.mxu0 %v3519_v0 }
 0x6c9   :  { %v3384_v32 = vpop.eup %3383 }
 0x6ca   :  { %v760_v33 = vsel %vm213_vm2, %v3384_v32, 0.0 }
 0x6cb   :  { %761 = vadd.xlane.f32.xlu0 %v760_v33  ;;  %v3350_v33 = vld [vmem:[%s4179_s4] sm:$0xff]  }
 0x6cd   :  { %v3386_v34 = vpop.eup %3385 }
 0x6ce   :  { %v763_v35 = vsel %vm213_vm2, %v3386_v34, 0.0 }
 0x6cf   :  { %764 = vadd.xlane.f32.xlu1 %v763_v35 }
 0x6e0   :  { %870 = vrot.lane.b32.xlu1 %v3654_v17, %s3527_s21 }
 0x6e1   :  { %920 = vrot.lane.b32.xlu0 %v3658_v21, %s3527_s21 }
 0x6e4   :  { %868 = vrot.lane.b32.xlu1 %v3654_v17, %s3528_s22 }
 0x6e5   :  { %918 = vrot.lane.b32.xlu0 %v3658_v21, %s3528_s22 }
 0x754   :  { %v762_v36 = vpop.xlane.xlu0 %761 }
 0x755   :  { %3387 = vrcp.f32 %v762_v36 }
 0x758   :  { %v765_v37 = vpop.xlane.xlu1 %764  ;;  %v921_v45 = vpop.permute.xlu0 %920 }
 0x759   :  { %3389 = vrcp.f32 %v765_v37  ;;  %v926_v21 = vsel %vm213_vm2, %v921_v45, 0 }
 0x75c   :  { %v871_v40 = vpop.permute.xlu1 %870  ;;  %v919_v47 = vpop.permute.xlu0 %918 }
 0x75d   :  { %v876_v43 = vsel %vm213_vm2, %v871_v40, 0 }
 0x760   :  { %v869_v46 = vpop.permute.xlu1 %868 }
 0x762   :  { %v3388_v38 = vpop.eup %3387 }
 0x763   :  { %v768_v39 = vmul.f32 %v3388_v38, %v3384_v32  ;;  %v3349_v32 = vld [vmem:[%s4179_s4 + $0x8] sm:$0xff]  }
 0x765   :  { %v770_v41 = vpack.c.bf16 %v768_v39, %v768_v39 }
 0x766   :  { %v3390_v42 = vpop.eup %3389 }
 0x767   :  { %3099 = vmatmul.mubr.msk.bf16.vlgmr.msra.gmra.mxu0 %vm213_vm2, %v770_v41  ;;  %v769_v44 = vmul.f32 %v3390_v42, %v3386_v34 }
 0x768   :  { %3109 = vmatpush3.bf16.xpose.msra.mxu0 %v876_v43  ;;  %3110 = vmatprep.mubr.msk.bf16.mxu0 %vm3520_vm0, %v3519_v0 }
 0x769   :  { %v771_v17 = vpack.c.bf16 %v769_v44, %v769_v44  ;;  %3120 = vmatprep.subr.bf16.mxu0 %v3519_v0 }
 0x76b   :  { %3105 = vmatmul.mubr.msk.bf16.vlgmr.msra.gmra.mxu1 %vm213_vm2, %v771_v17 }
 0x76c   :  { %3115 = vmatpush3.bf16.xpose.msra.mxu1 %v926_v21  ;;  %3116 = vmatprep.mubr.msk.bf16.mxu1 %vm3520_vm0, %v3519_v0 }
 0x76d   :  { %3126 = vmatprep.subr.bf16.mxu1 %v3519_v0 }
 0x76f   :  { %3111 = vmatmul.mubr.msk.bf16.vlgmr.msra.gmra.mxu0 %vm213_vm2, %v869_v46 }
 0x770   :  { %3122 = vmatprep.mubr.msk.bf16.mxu0 %vm3520_vm0, %v3519_v0 }
 0x773   :  { %3117 = vmatmul.mubr.msk.bf16.vlgmr.msra.gmra.mxu1 %vm213_vm2, %v919_v47 }
 0x774   :  { %3128 = vmatprep.mubr.msk.bf16.mxu1 %vm3520_vm0, %v3519_v0 }
 0x827   :  { %v814_v48 = vpop.f32.mrf.mxu0 }
 0x829   :  { %v3100_v51 = vpop.f32.mrf.mxu0 }
 0x82b   :  { %v817_v52 = vpop.f32.mrf.mxu0  ;;  %v862_v53 = vpop.f32.mrf.mxu1 }
 0x82c   :  { %v3322_v54 = vpack.i.bf16 %v862_v53, %v814_v48 }
 0x82d   :  { %v3101_v55 = vpop.f32.mrf.mxu0  ;;  %v3106_v56 = vpop.f32.mrf.mxu1 }
 0x82f   :  { %v865_v57 = vpop.f32.mrf.mxu1  ;;  %v912_v58 = vpop.f32.mrf.mxu0 }
 0x830   :  { %v968_v59 = vsel %vm213_vm2, %v912_v58, -inf }
 0x831   :  { %969 = vmax.xlane.f32.xlu1 %v968_v59  ;;  %v3107_v61 = vpop.f32.mrf.mxu1  ;;  %v3112_v62 = vpop.f32.mrf.mxu0 }
 0x833   :  { %v915_v2 = vpop.f32.mrf.mxu0  ;;  %v962_v5 = vpop.f32.mrf.mxu1 }
 0x834   :  { %v971_v6 = vsel %vm213_vm2, %v962_v5, -inf }
 0x835   :  { %v3113_v7 = vpop.f32.mrf.mxu0  ;;  %972 = vmax.xlane.f32.xlu0 %v971_v6  ;;  %v3118_v8 = vpop.f32.mrf.mxu1 }
 0x837   :  { %v965_v9 = vpop.f32.mrf.mxu1 }
 0x839   :  { %v3119_v11 = vpop.f32.mrf.mxu1 }
 0x8ba   :  { %v970_v12 = vpop.xlane.xlu1 %969 }
 0x8bb   :  { %v974_v14 = vsub.f32 %v912_v58, %v970_v12 }
 0x8bd   :  { %v976_v15 = vmul.f32 1.442695, %v974_v14 }
 0x8be   :  { %v973_v16 = vpop.xlane.xlu0 %972 }
 0x8bf   :  { %3391 = vpow2.f32 %v976_v15  ;;  %v975_v18 = vsub.f32 %v962_v5, %v973_v16 }
 0x8c1   :  { %v978_v19 = vmul.f32 1.442695, %v975_v18 }
 0x8c3   :  { %3393 = vpow2.f32 %v978_v19 }
 0x8cc   :  { %v3392_v20 = vpop.eup %3391 }
 0x8cd   :  { %v980_v22 = vsel %vm213_vm2, %v3392_v20, 0.0 }
 0x8ce   :  { %981 = vadd.xlane.f32.xlu0 %v980_v22 }
 0x8d0   :  { %v3394_v23 = vpop.eup %3393 }
 0x8d1   :  { %v983_v24 = vsel %vm213_vm2, %v3394_v23, 0.0 }
 0x8d2   :  { %984 = vadd.xlane.f32.xlu1 %v983_v24  ;;  %v3353_v24 = vld [vmem:[%s4185_s10 + $0x18] sm:$0xff]  }
 0x8e3   :  { %1040 = vrot.lane.b32.xlu1 %v3683_v50, %s3528_s22 }
 0x8e4   :  { %992 = vrot.lane.b32.xlu0 %v3681_v49, %s3528_s22 }
 0x8e7   :  { %3318 = vrot.lane.b32.xlu1 %v3317_v1, %s3517_s17 }
 0x8e8   :  { %3323 = vrot.lane.b32.xlu0 %v3322_v54, %s3529_s23 }
 0x957   :  { %v982_v25 = vpop.xlane.xlu0 %981 }
 0x958   :  { %3395 = vrcp.f32 %v982_v25 }
 0x95b   :  { %v985_v26 = vpop.xlane.xlu1 %984  ;;  %v993_v27 = vpop.permute.xlu0 %992 }
 0x95c   :  { %3397 = vrcp.f32 %v985_v26  ;;  %v998_v28 = vsel %vm336_vm3, %v993_v27, 0 }
 0x95d   :  { %3121 = vmatpush3.bf16.msra.mxu0 %v998_v28 }
 0x95e   :  { %3132 = vmatprep.subr.bf16.mxu0 %v3519_v0 }
 0x95f   :  { %v1041_v50 = vpop.permute.xlu1 %1040  ;;  %v3324_v17 = vpop.permute.xlu0 %3323 }
 0x960   :  { %v1046_v49 = vsel %vm336_vm3, %v1041_v50, 0  ;;  %v3326_v47 = vunpack.i.h.bf16 %v3324_v17  ;;  %v3325_v48 = vunpack.i.l.bf16 %v3324_v17 }
 0x961   :  { %3127 = vmatpush3.bf16.msra.mxu1 %v1046_v49 }
 0x962   :  { %3140 = vmatprep.subr.bf16.mxu1 %v3519_v0 }
 0x963   :  { %v3319_v43 = vpop.permute.xlu1 %3318 }
 0x964   :  { %v3321_v44 = vunpack.i.h.bf16 %v3319_v43  ;;  %v3320_v45 = vunpack.i.l.bf16 %v3319_v43 }
 0x965   :  { %v3396_v60 = vpop.eup %3395 }
 0x966   :  { %v988_v63 = vmul.f32 %v3396_v60, %v3392_v20  ;;  %v1113_v21 = vsel %vm213_vm2, %v3715_v13, %v3321_v44  ;;  %v1112_v46 = vsel %vm213_vm2, %v3713_v10, %v3320_v45  ;;  %v2837_v10 = vld [vmem:[%s4180_s5] ss:$0 sm:$0xff] }
 0x967   :  { %v1115_v54 = vsel %vm1114_vm4, %v1112_v46, %v3325_v48  ;;  %v1116_v55 = vsel %vm1114_vm4, %v1113_v21, %v3326_v47  ;;  %v2847_v48 = vld [vmem:[%s4186_s11] ss:$0 sm:$0xff] }
 0x968   :  { %v990_v1 = vpack.c.bf16 %v988_v63, %v988_v63 }
 0x969   :  { %v3398_v29 = vpop.eup %3397 }
 0x96a   :  { %3123 = vmatmul.mubr.msk.bf16.vlgmr.msra.gmra.mxu0 %vm213_vm2, %v990_v1  ;;  %v989_v30 = vmul.f32 %v3398_v29, %v3394_v23  ;;  %v3352_v23 = vld [vmem:[%s4183_s8] sm:$0xff]  }
 0x96b   :  { %3136 = vmatprep.mubr.msk.bf16.mxu0 %vm3520_vm0, %v3519_v0  ;;  %3133 = vmatpush3.bf16.msra.mxu0 %v3349_v32  ;;  %v2841_v1 = vld [vmem:[%s4181_s6] ss:$0 sm:$0xff] }
 0x96c   :  { %v991_v31 = vpack.c.bf16 %v989_v30, %v989_v30  ;;  %3134 = vmatprep.subr.bf16.mxu0 %v3519_v0  ;;  %v2842_v32 = vld [vmem:[%s4182_s7] ss:$0 sm:$0xff] }
 0x96e   :  { %3129 = vmatmul.mubr.msk.bf16.vlgmr.msra.gmra.mxu1 %vm213_vm2, %v991_v31 }
 0x96f   :  { %3144 = vmatprep.mubr.msk.bf16.mxu1 %vm3520_vm0, %v3519_v0  ;;  %3135 = vmatpush3.bf16.msra.mxu0 %v3350_v33 }
 0x970   :  { %3148 = vmatprep.subr.bf16.mxu0 %v3519_v0 }
 0xa2a   :  { %v1034_v34 = vpop.f32.mrf.mxu0 }
 0xa2c   :  { %v3124_v35 = vpop.f32.mrf.mxu0 }
 0xa2e   :  { %v1037_v36 = vpop.f32.mrf.mxu0  ;;  %v1082_v37 = vpop.f32.mrf.mxu1 }
 0xa2f   :  { %v3327_v38 = vpack.i.bf16 %v1082_v37, %v1034_v34  ;;  %v3354_v37 = vld [vmem:[%s4185_s10 + $0x10] sm:$0xff]  }
 0xa30   :  { %v3125_v39 = vpop.f32.mrf.mxu0  ;;  %v3130_v40 = vpop.f32.mrf.mxu1 }
 0xa31   :  { %3328 = vrot.lane.b32.xlu1 %v3327_v38, %s3530_s26  ;;  %v3355_v38 = vld [vmem:[%s4185_s10 + $0x8] sm:$0xff]   ;;  %v3356_v39 = vld [vmem:[%s4185_s10] sm:$0xff]  }
 0xa32   :  { %v1085_v41 = vpop.f32.mrf.mxu1  ;;  %v2843_v40 = vld [vmem:[%s4184_s9] ss:$0 sm:$0xff] }
 0xa34   :  { %v3131_v42 = vpop.f32.mrf.mxu1 }
 0xaa3   :  { %v3329_v51 = vpop.permute.xlu1 %3328 }
 0xaa4   :  { %v3331_v52 = vunpack.i.h.bf16 %v3329_v51  ;;  %v3330_v53 = vunpack.i.l.bf16 %v3329_v51 }
 0xaa6   :  { %v1119_v56 = vsel %vm1117_vm5, %v1116_v55, %v3331_v52  ;;  %v1118_v57 = vsel %vm1117_vm5, %v1115_v54, %v3330_v53 }
 0xaa7   :  { %v1120_v58 = vpack.c.bf16 %v1119_v56, %v1118_v57 }
 0xaa9   :  { %3137 = vmatmul.mubr.msk.bf16.vlgmr.msra.gmra.mxu0 %vm107_vm1, %v1120_v58 }
 0xaaa   :  { %3156 = vmatprep.mubr.msk.bf16.mxu0 %vm3520_vm0, %v3519_v0  ;;  %3149 = vmatpush3.bf16.msra.mxu0 %v3353_v24 }
 0xaab   :  { %3150 = vmatprep.subr.bf16.mxu0 %v3519_v0 }
 0xaae   :  { %3151 = vmatpush3.bf16.msra.mxu0 %v3354_v37 }
 0xaaf   :  { %3152 = vmatprep.subr.bf16.mxu0 %v3519_v0 }
 0xab2   :  { %3153 = vmatpush3.bf16.msra.mxu0 %v3355_v38 }
 0xab3   :  { %3154 = vmatprep.subr.bf16.mxu0 %v3519_v0 }
 0xab6   :  { %3155 = vmatpush3.bf16.msra.mxu0 %v3356_v39 }
 0xab7   :  { %3176 = vmatprep.subr.bf16.mxu0 %v3519_v0 }
 0xb69   :  { %v1181_v13 = vpop.f32.mrf.mxu0 }
 0xb6a   :  { %v1182_v59 = vadd.f32 %v2837_v10, %v1181_v13 }
 0xb6b   :  { %v3138_v61 = vpop.f32.mrf.mxu0 }
 0xb6c   :  { %v1188_v62 = vadd.f32 %v1182_v59, %v3631_v3  ;;  %v3357_v59 = vld [vmem:[%s4177_s2 + $0x18] sm:$0xff]   ;;  %v3358_v61 = vld [vmem:[%s4177_s2 + $0x10] sm:$0xff]  }
 0xb6d   :  { %v1184_v2 = vpop.f32.mrf.mxu0 }
 0xb6e   :  { %v1185_v5 = vadd.f32 %v2837_v10, %v1184_v2  ;;  %v1192_v6 = vsel %vm107_vm1, %v1188_v62, 0.0 }
 0xb6f   :  { %1193 = vadd.xlane.f32.xlu0 %v1192_v6  ;;  %v3139_v7 = vpop.f32.mrf.mxu0 }
 0xb70   :  { %v1189_v8 = vadd.f32 %v1185_v5, %v3633_v4  ;;  %v3351_v4 = vld [vmem:[%s4183_s8 + $0x8] sm:$0xff]  }
 0xb71   :  { %3141 = vmatpush3.bf16.msra.mxu1 %v3351_v4  ;;  %v2853_v4 = vld [vmem:[%s4187_s12] ss:$0 sm:$0xff] }
 0xb72   :  { %v1195_v9 = vsel %vm107_vm1, %v1189_v8, 0.0  ;;  %3142 = vmatprep.subr.bf16.mxu1 %v3519_v0 }
 0xb73   :  { %1196 = vadd.xlane.f32.xlu1 %v1195_v9 }
 0xb75   :  { %3143 = vmatpush3.bf16.msra.mxu1 %v3352_v23 }
 0xb76   :  { %3160 = vmatprep.subr.bf16.mxu1 %v3519_v0 }
 0xbf8   :  { %v1194_v11 = vpop.xlane.xlu0 %1193 }
 0xbf9   :  { %v1199_v12 = vmul.f32 0.03125, %v1194_v11 }
 0xbfb   :  { %v1201_v14 = vsub.f32 %v1188_v62, %v1199_v12 }
 0xbfc   :  { %v1197_v15 = vpop.xlane.xlu1 %1196 }
 0xbfd   :  { %v1200_v16 = vmul.f32 0.03125, %v1197_v15  ;;  %v1203_v18 = vmul.f32 %v1201_v14, %v1201_v14 }
 0xbff   :  { %v1202_v19 = vsub.f32 %v1189_v8, %v1200_v16  ;;  %v1205_v3 = vsel %vm107_vm1, %v1203_v18, 0.0 }
 0xc00   :  { %1206 = vadd.xlane.f32.xlu0 %v1205_v3 }
 0xc01   :  { %v1204_v20 = vmul.f32 %v1202_v19, %v1202_v19 }
 0xc03   :  { %v1208_v22 = vsel %vm107_vm1, %v1204_v20, 0.0 }
 0xc04   :  { %1209 = vadd.xlane.f32.xlu0 %v1208_v22 }
 0xc89   :  { %v1207_v25 = vpop.xlane.xlu0 %1206 }
 0xc8a   :  { %v1211_v26 = vmul.f32 0.03125, %v1207_v25 }
 0xc8c   :  { %v1213_v27 = vadd.f32 1e-05, %v1211_v26  ;;  %v2854_v26 = vld [vmem:[%s4188_s13] ss:$0 sm:$0xff] }
 0xc8d   :  { %v1210_v28 = vpop.xlane.xlu0 %1209 }
 0xc8e   :  { %3399 = vrsqrt.f32 %v1213_v27  ;;  %v1212_v50 = vmul.f32 0.03125, %v1210_v28 }
 0xc90   :  { %v1214_v49 = vadd.f32 1e-05, %v1212_v50 }
 0xc92   :  { %3401 = vrsqrt.f32 %v1214_v49 }
 0xc9b   :  { %v3400_v60 = vpop.eup %3399 }
 0xc9c   :  { %v1217_v63 = vmul.f32 %v3400_v60, %v1201_v14  ;;  %v3447_v60 = vld [vmem:[#allocation5] sm:$0xff] }
 0xc9e   :  { %v1225_v31 = vmul.f32 %v2841_v1, %v1217_v63 }
 0xc9f   :  { %v3402_v29 = vpop.eup %3401 }
 0xca0   :  { %v1218_v30 = vmul.f32 %v3402_v29, %v1202_v19  ;;  %v1233_v34 = vadd.f32 %v2842_v32, %v1225_v31 }
 0xca2   :  { %v1226_v33 = vmul.f32 %v2841_v1, %v1218_v30  ;;  %v3448_v1 = vld [vmem:[#allocation5 + $0x8] sm:$0xff] }
 0xca4   :  { %v1234_v35 = vadd.f32 %v2842_v32, %v1226_v33 }
 0xca6   :  { %v1235_v36 = vpack.c.bf16 %v1234_v35, %v1233_v34 }
 0xca8   :  { %3145 = vmatmul.mubr.msk.bf16.vlgmr.msra.gmra.mxu1 %vm107_vm1, %v1235_v36 }
 0xca9   :  { %3164 = vmatprep.mubr.msk.bf16.mxu1 %vm3520_vm0, %v3519_v0  ;;  %3161 = vmatpush3.bf16.msra.mxu1 %v3357_v59 }
 0xcaa   :  { %3162 = vmatprep.subr.bf16.mxu1 %v3519_v0 }
 0xcad   :  { %3163 = vmatpush3.bf16.msra.mxu1 %v3358_v61 }
 0xcae   :  { %3168 = vmatprep.subr.bf16.mxu1 %v3519_v0 }
 0xd68   :  { %v1296_v41 = vpop.f32.mrf.mxu1 }
 0xd69   :  { %v1297_v43 = vadd.f32 %v2843_v40, %v1296_v41 }
 0xd6a   :  { %v3146_v42 = vpop.f32.mrf.mxu1 }
 0xd6b   :  { %v1303_v21 = vmax.f32 %v1297_v43, 0.0 }
 0xd6c   :  { %v1299_v44 = vpop.f32.mrf.mxu1 }
 0xd6d   :  { %v1300_v45 = vadd.f32 %v2843_v40, %v1299_v44 }
 0xd6e   :  { %v3147_v17 = vpop.f32.mrf.mxu1 }
 0xd6f   :  { %v1304_v46 = vmax.f32 %v1300_v45, 0.0 }
 0xd71   :  { %v1305_v47 = vpack.c.bf16 %v1304_v46, %v1303_v21 }
 0xd73   :  { %3157 = vmatmul.mubr.msk.bf16.vlgmr.msra.gmra.mxu0 %vm1345_vm6, %v1305_v47 }
 0xd74   :  { %3178 = vmatprep.mubr.msk.bf16.mxu0 %vm3520_vm0, %v3519_v0 }
 0xe33   :  { %v1383_v51 = vpop.f32.mrf.mxu0 }
 0xe34   :  { %v1384_v52 = vadd.f32 %v2847_v48, %v1383_v51 }
 0xe35   :  { %v3158_v53 = vpop.f32.mrf.mxu0 }
 0xe36   :  { %v1390_v54 = vadd.f32 %v1384_v52, %v1233_v34  ;;  %v2860_v34 = vld [vmem:[%s4178_s3 + $0x1] ss:$0 sm:$0xff] }
 0xe37   :  { %v1386_v55 = vpop.f32.mrf.mxu0 }
 0xe38   :  { %v1387_v56 = vadd.f32 %v2847_v48, %v1386_v55  ;;  %v1394_v57 = vsel %vm107_vm1, %v1390_v54, 0.0 }
 0xe39   :  { %1395 = vadd.xlane.f32.xlu1 %v1394_v57  ;;  %v3159_v58 = vpop.f32.mrf.mxu0 }
 0xe3a   :  { %v1391_v10 = vadd.f32 %v1387_v56, %v1234_v35 }
 0xe3c   :  { %v1397_v13 = vsel %vm107_vm1, %v1391_v10, 0.0 }
 0xe3d   :  { %1398 = vadd.xlane.f32.xlu0 %v1397_v13 }
 0xec2   :  { %v1396_v62 = vpop.xlane.xlu1 %1395 }
 0xec3   :  { %v1400_v2 = vmul.f32 0.03125, %v1396_v62 }
 0xec5   :  { %v1402_v5 = vsub.f32 %v1390_v54, %v1400_v2 }
 0xec6   :  { %v1399_v6 = vpop.xlane.xlu0 %1398 }
 0xec7   :  { %v1401_v7 = vmul.f32 0.03125, %v1399_v6  ;;  %v1404_v8 = vmul.f32 %v1402_v5, %v1402_v5 }
 0xec9   :  { %v1403_v9 = vsub.f32 %v1391_v10, %v1401_v7  ;;  %v1406_v11 = vsel %vm107_vm1, %v1404_v8, 0.0 }
 0xeca   :  { %1407 = vadd.xlane.f32.xlu1 %v1406_v11 }
 0xecb   :  { %v1405_v12 = vmul.f32 %v1403_v9, %v1403_v9 }
 0xecd   :  { %v1409_v14 = vsel %vm107_vm1, %v1405_v12, 0.0 }
 0xece   :  { %1410 = vadd.xlane.f32.xlu0 %v1409_v14 }
 0xedb   :  { %1511 = vrot.lane.b32.xlu1 %v3357_v59, %s3521_s27 }
 0xee4   :  { %1509 = vrot.lane.b32.xlu0 %v3358_v61, %s3521_s27 }
 0xf53   :  { %v1408_v15 = vpop.xlane.xlu1 %1407 }
 0xf54   :  { %v1412_v16 = vmul.f32 0.03125, %v1408_v15 }
 0xf56   :  { %v1414_v18 = vadd.f32 1e-05, %v1412_v16 }
 0xf57   :  { %v1411_v19 = vpop.xlane.xlu0 %1410  ;;  %v1512_v30 = vpop.permute.xlu1 %1511 }
 0xf58   :  { %3403 = vrsqrt.f32 %v1414_v18  ;;  %v1413_v3 = vmul.f32 0.03125, %v1411_v19 }
 0xf5a   :  { %v1415_v20 = vadd.f32 1e-05, %v1413_v3 }
 0xf5b   :  { %v1510_v32 = vpop.permute.xlu0 %1509 }
 0xf5c   :  { %3405 = vrsqrt.f32 %v1415_v20 }
 0xf65   :  { %v3404_v22 = vpop.eup %3403 }
 0xf66   :  { %v1418_v23 = vmul.f32 %v3404_v22, %v1402_v5 }
 0xf68   :  { %v1426_v24 = vmul.f32 %v2853_v4, %v1418_v23 }
 0xf69   :  { %v3406_v25 = vpop.eup %3405 }
 0xf6a   :  { %v1419_v27 = vmul.f32 %v3406_v25, %v1403_v9  ;;  %v3909_v50 = vadd.f32 %v2854_v26, %v1426_v24 }
 0xf6c   :  { %v1427_v28 = vmul.f32 %v2853_v4, %v1419_v27  ;;  %v1443_v63 = vadd.f32 %v3447_v60, %v3909_v50 }
 0xf6e   :  { %v3911_v49 = vadd.f32 %v2854_v26, %v1427_v28 }
 0xf70   :  { %v1444_v29 = vadd.f32 %v3448_v1, %v3911_v49  ;;  %v1508_v33 = vpack.c.bf16 %v3911_v49, %v3909_v50 }
 0xf72   :  { %v1445_v31 = vpack.c.bf16 %v1444_v29, %v1443_v63 }
 0xf74   :  { %3165 = vmatmul.mubr.msk.bf16.vlgmr.msra.gmra.mxu1 %vm107_vm1, %v1445_v31 }
 0xf75   :  { %3169 = vmatpush3.bf16.msra.mxu1 %v1512_v30  ;;  %3172 = vmatprep.mubr.msk.bf16.mxu1 %vm3520_vm0, %v3519_v0 }
 0xf76   :  { %3170 = vmatprep.subr.bf16.mxu1 %v3519_v0 }
 0xf79   :  { %3171 = vmatpush3.bf16.msra.mxu1 %v1510_v32 }
 0xf7a   :  { %3182 = vmatprep.subr.bf16.mxu1 %v3519_v0 }
 0xf7c   :  { %3173 = vmatmul.mubr.msk.bf16.vlgmr.msra.gmra.mxu1 %vm107_vm1, %v1508_v33 }
 0xf7d   :  { %3184 = vmatprep.mubr.msk.bf16.mxu1 %vm3520_vm0, %v3519_v0 }
0x1034   :  { %v1501_v35 = vpop.f32.mrf.mxu1 }
0x1035   :  { %v1502_v36 = vadd.f32 %v2860_v34, %v1501_v35 }
0x1036   :  { %v3166_v37 = vpop.f32.mrf.mxu1 }
0x1037   :  { %v3928_v38 = vpack.c.bf16 %v1502_v36, %v1502_v36 }
0x1038   :  { %v1504_v39 = vpop.f32.mrf.mxu1 }
0x1039   :  { %v1505_v40 = vadd.f32 %v2860_v34, %v1504_v39  ;;  %1567 = vrot.lane.b32.xlu1 %v3928_v38, %s3522_s30 }
0x103a   :  { %v3167_v41 = vpop.f32.mrf.mxu1 }
0x103b   :  { %v3932_v42 = vpack.c.bf16 %v1505_v40, %v1505_v40 }
0x103c   :  { %v1555_v43 = vpop.f32.mrf.mxu1 }
0x103d   :  { %1616 = vrot.lane.b32.xlu1 %v3932_v42, %s3522_s30 }
0x103e   :  { %v3174_v44 = vpop.f32.mrf.mxu1 }
0x1040   :  { %v1558_v45 = vpop.f32.mrf.mxu1 }
0x1042   :  { %v3175_v17 = vpop.f32.mrf.mxu1 }
0x10ab   :  { %v1568_v21 = vpop.permute.xlu1 %1567 }
0x10ac   :  { %v1573_v46 = vsel %vm213_vm2, %v1568_v21, 0 }
0x10ad   :  { %3177 = vmatpush3.bf16.xpose.msra.mxu0 %v1573_v46 }
0x10ae   :  { %3188 = vmatprep.subr.bf16.mxu0 %v3519_v0 }
0x10af   :  { %v1617_v47 = vpop.permute.xlu1 %1616 }
0x10b0   :  { %v1622_v48 = vsel %vm213_vm2, %v1617_v47, 0 }
0x10b1   :  { %3183 = vmatpush3.bf16.xpose.msra.mxu1 %v1622_v48 }
0x10b2   :  { %3194 = vmatprep.subr.bf16.mxu1 %v3519_v0 }
0x10b4   :  { %3179 = vmatmul.mubr.msk.bf16.vlgmr.msra.gmra.mxu0 %vm213_vm2, %v3928_v38 }
0x10b5   :  { %3190 = vmatprep.mubr.msk.bf16.mxu0 %vm3520_vm0, %v3519_v0 }
0x10b8   :  { %3185 = vmatmul.mubr.msk.bf16.vlgmr.msra.gmra.mxu1 %vm213_vm2, %v3932_v42 }
0x10b9   :  { %3196 = vmatprep.mubr.msk.bf16.mxu1 %vm3520_vm0, %v3519_v0 }
0x1174   :  { %v1609_v51 = vpop.f32.mrf.mxu0 }
0x1175   :  { %v1664_v52 = vsel %vm213_vm2, %v1609_v51, -inf }
0x1176   :  { %1665 = vmax.xlane.f32.xlu0 %v1664_v52  ;;  %v3180_v53 = vpop.f32.mrf.mxu0 }
0x1178   :  { %v1612_v54 = vpop.f32.mrf.mxu0  ;;  %v1658_v55 = vpop.f32.mrf.mxu1 }
0x1179   :  { %v1667_v56 = vsel %vm213_vm2, %v1658_v55, -inf }
0x117a   :  { %v3181_v57 = vpop.f32.mrf.mxu0  ;;  %1668 = vmax.xlane.f32.xlu1 %v1667_v56  ;;  %v3186_v58 = vpop.f32.mrf.mxu1 }
0x117c   :  { %v1661_v10 = vpop.f32.mrf.mxu1 }
0x117e   :  { %v3187_v13 = vpop.f32.mrf.mxu1 }
0x118b   :  { %1515 = vrot.lane.b32.xlu1 %v2860_v34, %s3521_s27 }
0x118f   :  { %1832 = vrot.lane.b32.xlu1 %v3932_v42, %s3523_s15 }
0x1193   :  { %1780 = vrot.lane.b32.xlu1 %v3928_v38, %s3524_s18 }
0x11ff   :  { %v1666_v59 = vpop.xlane.xlu0 %1665 }
0x1200   :  { %v1670_v61 = vsub.f32 %v1609_v51, %v1666_v59 }
0x1202   :  { %v1672_v62 = vmul.f32 1.442695, %v1670_v61 }
0x1203   :  { %v1669_v2 = vpop.xlane.xlu1 %1668 }
0x1204   :  { %3407 = vpow2.f32 %v1672_v62  ;;  %v1671_v5 = vsub.f32 %v1658_v55, %v1669_v2 }
0x1206   :  { %v1674_v6 = vmul.f32 1.442695, %v1671_v5 }
0x1207   :  { %v1516_v7 = vpop.permute.xlu1 %1515 }
0x1208   :  { %3409 = vpow2.f32 %v1674_v6  ;;  %v1556_v8 = vadd.f32 %v1555_v43, %v1516_v7  ;;  %v1559_v9 = vadd.f32 %v1558_v45, %v1516_v7 }
0x120a   :  { %v3955_v11 = vpack.c.bf16 %v1556_v8, %v1556_v8  ;;  %v3957_v12 = vpack.c.bf16 %v1559_v9, %v1559_v9 }
0x120b   :  { %v1833_v60 = vpop.permute.xlu1 %1832 }
0x120c   :  { %v1692_v14 = vsel %vm336_vm3, %v3955_v11, 0  ;;  %v1738_v15 = vsel %vm336_vm3, %v3957_v12, 0  ;;  %v1838_v1 = vsel %vm213_vm2, %v1833_v60, 0 }
0x120d   :  { %3189 = vmatpush3.bf16.msra.mxu0 %v1692_v14  ;;  %3195 = vmatpush3.bf16.msra.mxu1 %v1738_v15 }
0x120e   :  { %3200 = vmatprep.subr.bf16.mxu0 %v3519_v0  ;;  %3206 = vmatprep.subr.bf16.mxu1 %v3519_v0 }
0x120f   :  { %v1781_v29 = vpop.permute.xlu1 %1780 }
0x1211   :  { %v3408_v16 = vpop.eup %3407 }
0x1212   :  { %v1676_v18 = vsel %vm213_vm2, %v3408_v16, 0.0 }
0x1213   :  { %1677 = vadd.xlane.f32.xlu0 %v1676_v18 }
0x1215   :  { %v3410_v19 = vpop.eup %3409 }
0x1216   :  { %v1679_v3 = vsel %vm213_vm2, %v3410_v19, 0.0 }
0x1217   :  { %1680 = vadd.xlane.f32.xlu0 %v1679_v3 }
0x122d   :  { %1782 = vrot.lane.b32.xlu0 %v3928_v38, %s3523_s15  ;;  %s3531_s15 = smov [#allocation7]  }
0x1231   :  { %1830 = vrot.lane.b32.xlu0 %v3932_v42, %s3524_s18 }
0x129c   :  { %v1678_v20 = vpop.xlane.xlu0 %1677 }
0x129d   :  { %3411 = vrcp.f32 %v1678_v20 }
0x12a0   :  { %v1681_v22 = vpop.xlane.xlu0 %1680 }
0x12a1   :  { %3413 = vrcp.f32 %v1681_v22 }
0x12a4   :  { %v1783_v24 = vpop.permute.xlu0 %1782 }
0x12a5   :  { %v1788_v27 = vsel %vm213_vm2, %v1783_v24, 0 }
0x12a8   :  { %v1831_v30 = vpop.permute.xlu0 %1830 }
0x12aa   :  { %v3412_v4 = vpop.eup %3411 }
0x12ab   :  { %v1684_v23 = vmul.f32 %v3412_v4, %v3408_v16 }
0x12ad   :  { %v1686_v25 = vpack.c.bf16 %v1684_v23, %v1684_v23 }
0x12ae   :  { %v3414_v26 = vpop.eup %3413 }
0x12af   :  { %3191 = vmatmul.mubr.msk.bf16.vlgmr.msra.gmra.mxu0 %vm213_vm2, %v1686_v25  ;;  %v1685_v28 = vmul.f32 %v3414_v26, %v3410_v19 }
0x12b0   :  { %3201 = vmatpush3.bf16.xpose.msra.mxu0 %v1788_v27  ;;  %3202 = vmatprep.mubr.msk.bf16.mxu0 %vm3520_vm0, %v3519_v0 }
0x12b1   :  { %v1687_v63 = vpack.c.bf16 %v1685_v28, %v1685_v28  ;;  %3212 = vmatprep.subr.bf16.mxu0 %v3519_v0 }
0x12b3   :  { %3197 = vmatmul.mubr.msk.bf16.vlgmr.msra.gmra.mxu1 %vm213_vm2, %v1687_v63 }
0x12b4   :  { %3207 = vmatpush3.bf16.xpose.msra.mxu1 %v1838_v1  ;;  %3208 = vmatprep.mubr.msk.bf16.mxu1 %vm3520_vm0, %v3519_v0 }
0x12b5   :  { %3218 = vmatprep.subr.bf16.mxu1 %v3519_v0 }
0x12b7   :  { %3203 = vmatmul.mubr.msk.bf16.vlgmr.msra.gmra.mxu0 %vm213_vm2, %v1781_v29 }
0x12b8   :  { %3214 = vmatprep.mubr.msk.bf16.mxu0 %vm3520_vm0, %v3519_v0 }
0x12bb   :  { %3209 = vmatmul.mubr.msk.bf16.vlgmr.msra.gmra.mxu1 %vm213_vm2, %v1831_v30 }
0x12bc   :  { %3220 = vmatprep.mubr.msk.bf16.mxu1 %vm3520_vm0, %v3519_v0 }
0x136f   :  { %v3987_v31 = vpop.f32.mrf.mxu0 }
0x1371   :  { %v3192_v32 = vpop.f32.mrf.mxu0 }
0x1373   :  { %v1731_v33 = vpop.f32.mrf.mxu0  ;;  %v3989_v34 = vpop.f32.mrf.mxu1 }
0x1375   :  { %v3193_v35 = vpop.f32.mrf.mxu0  ;;  %v3198_v36 = vpop.f32.mrf.mxu1 }
0x1377   :  { %v1777_v37 = vpop.f32.mrf.mxu1  ;;  %v1824_v39 = vpop.f32.mrf.mxu0 }
0x1378   :  { %v1880_v40 = vsel %vm213_vm2, %v1824_v39, -inf }
0x1379   :  { %1881 = vmax.xlane.f32.xlu1 %v1880_v40  ;;  %v3199_v41 = vpop.f32.mrf.mxu1  ;;  %v3204_v43 = vpop.f32.mrf.mxu0 }
0x137b   :  { %v1827_v44 = vpop.f32.mrf.mxu0  ;;  %v1874_v45 = vpop.f32.mrf.mxu1 }
0x137c   :  { %v1883_v17 = vsel %vm213_vm2, %v1874_v45, -inf }
0x137d   :  { %v3205_v21 = vpop.f32.mrf.mxu0  ;;  %1884 = vmax.xlane.f32.xlu0 %v1883_v17  ;;  %v3210_v46 = vpop.f32.mrf.mxu1 }
0x137f   :  { %v1877_v47 = vpop.f32.mrf.mxu1 }
0x1381   :  { %v3211_v48 = vpop.f32.mrf.mxu1 }
0x138a   :  { %1954 = vrot.lane.b32.xlu1 %v3957_v12, %s3524_s18 }
0x1393   :  { %1905 = vrot.lane.b32.xlu0 %v3955_v11, %s3524_s18 }
0x1402   :  { %v1882_v51 = vpop.xlane.xlu1 %1881 }
0x1403   :  { %v1886_v52 = vsub.f32 %v1824_v39, %v1882_v51 }
0x1405   :  { %v1888_v53 = vmul.f32 1.442695, %v1886_v52 }
0x1406   :  { %v1955_v54 = vpop.permute.xlu1 %1954  ;;  %v1885_v55 = vpop.xlane.xlu0 %1884 }
0x1407   :  { %3415 = vpow2.f32 %v1888_v53  ;;  %v1960_v56 = vsel %vm336_vm3, %v1955_v54, 0  ;;  %v1887_v57 = vsub.f32 %v1874_v45, %v1885_v55 }
0x1408   :  { %3219 = vmatpush3.bf16.msra.mxu1 %v1960_v56 }
0x1409   :  { %v1890_v58 = vmul.f32 1.442695, %v1887_v57  ;;  %3230 = vmatprep.subr.bf16.mxu1 %v3519_v0 }
0x140a   :  { %v1906_v10 = vpop.permute.xlu0 %1905 }
0x140b   :  { %3417 = vpow2.f32 %v1890_v58  ;;  %v1911_v13 = vsel %vm336_vm3, %v1906_v10, 0 }
0x140c   :  { %3213 = vmatpush3.bf16.msra.mxu0 %v1911_v13 }
0x140d   :  { %3224 = vmatprep.subr.bf16.mxu0 %v3519_v0 }
0x1414   :  { %v3416_v59 = vpop.eup %3415 }
0x1415   :  { %v1892_v61 = vsel %vm213_vm2, %v3416_v59, 0.0 }
0x1416   :  { %1893 = vadd.xlane.f32.xlu0 %v1892_v61 }
0x1418   :  { %v3418_v62 = vpop.eup %3417 }
0x1419   :  { %v1895_v2 = vsel %vm213_vm2, %v3418_v62, 0.0 }
0x141a   :  { %1896 = vadd.xlane.f32.xlu1 %v1895_v2 }
0x142b   :  { %2004 = vrot.lane.b32.xlu1 %v3928_v38, %s3525_s19 }
0x142c   :  { %2054 = vrot.lane.b32.xlu0 %v3932_v42, %s3525_s19 }
0x142f   :  { %2002 = vrot.lane.b32.xlu1 %v3928_v38, %s3526_s20 }
0x1430   :  { %2052 = vrot.lane.b32.xlu0 %v3932_v42, %s3526_s20 }
0x149f   :  { %v1894_v5 = vpop.xlane.xlu0 %1893 }
0x14a0   :  { %3419 = vrcp.f32 %v1894_v5 }
0x14a3   :  { %v1897_v6 = vpop.xlane.xlu1 %1896  ;;  %v2055_v19 = vpop.permute.xlu0 %2054 }
0x14a4   :  { %3421 = vrcp.f32 %v1897_v6  ;;  %v2060_v20 = vsel %vm213_vm2, %v2055_v19, 0 }
0x14a7   :  { %v2005_v9 = vpop.permute.xlu1 %2004  ;;  %v2053_v4 = vpop.permute.xlu0 %2052 }
0x14a8   :  { %v2010_v16 = vsel %vm213_vm2, %v2005_v9, 0 }
0x14ab   :  { %v2003_v22 = vpop.permute.xlu1 %2002 }
0x14ad   :  { %v3420_v7 = vpop.eup %3419 }
0x14ae   :  { %v1900_v8 = vmul.f32 %v3420_v7, %v3416_v59 }
0x14b0   :  { %v1902_v14 = vpack.c.bf16 %v1900_v8, %v1900_v8 }
0x14b1   :  { %v3422_v15 = vpop.eup %3421 }
0x14b2   :  { %3215 = vmatmul.mubr.msk.bf16.vlgmr.msra.gmra.mxu0 %vm213_vm2, %v1902_v14  ;;  %v1901_v18 = vmul.f32 %v3422_v15, %v3418_v62 }
0x14b3   :  { %3225 = vmatpush3.bf16.xpose.msra.mxu0 %v2010_v16  ;;  %3226 = vmatprep.mubr.msk.bf16.mxu0 %vm3520_vm0, %v3519_v0 }
0x14b4   :  { %v1903_v3 = vpack.c.bf16 %v1901_v18, %v1901_v18  ;;  %3236 = vmatprep.subr.bf16.mxu0 %v3519_v0 }
0x14b6   :  { %3221 = vmatmul.mubr.msk.bf16.vlgmr.msra.gmra.mxu1 %vm213_vm2, %v1903_v3 }
0x14b7   :  { %3231 = vmatpush3.bf16.xpose.msra.mxu1 %v2060_v20  ;;  %3232 = vmatprep.mubr.msk.bf16.mxu1 %vm3520_vm0, %v3519_v0 }
0x14b8   :  { %3242 = vmatprep.subr.bf16.mxu1 %v3519_v0 }
0x14ba   :  { %3227 = vmatmul.mubr.msk.bf16.vlgmr.msra.gmra.mxu0 %vm213_vm2, %v2003_v22 }
0x14bb   :  { %3238 = vmatprep.mubr.msk.bf16.mxu0 %vm3520_vm0, %v3519_v0 }
0x14be   :  { %3233 = vmatmul.mubr.msk.bf16.vlgmr.msra.gmra.mxu1 %vm213_vm2, %v2053_v4 }
0x14bf   :  { %3244 = vmatprep.mubr.msk.bf16.mxu1 %vm3520_vm0, %v3519_v0 }
0x1572   :  { %v4027_v23 = vpop.f32.mrf.mxu0 }
0x1574   :  { %v3216_v24 = vpop.f32.mrf.mxu0 }
0x1576   :  { %v1950_v25 = vpop.f32.mrf.mxu0  ;;  %v4029_v26 = vpop.f32.mrf.mxu1 }
0x1577   :  { %v3332_v27 = vpack.i.bf16 %v4029_v26, %v4027_v23 }
0x1578   :  { %v3217_v28 = vpop.f32.mrf.mxu0  ;;  %v3222_v60 = vpop.f32.mrf.mxu1 }
0x157a   :  { %v1999_v63 = vpop.f32.mrf.mxu1  ;;  %v2046_v1 = vpop.f32.mrf.mxu0 }
0x157b   :  { %v2102_v29 = vsel %vm213_vm2, %v2046_v1, -inf }
0x157c   :  { %2103 = vmax.xlane.f32.xlu1 %v2102_v29  ;;  %v3223_v30 = vpop.f32.mrf.mxu1  ;;  %v3228_v32 = vpop.f32.mrf.mxu0 }
0x157e   :  { %v2049_v33 = vpop.f32.mrf.mxu0  ;;  %v2096_v35 = vpop.f32.mrf.mxu1 }
0x157f   :  { %v2105_v36 = vsel %vm213_vm2, %v2096_v35, -inf }
0x1580   :  { %v3229_v37 = vpop.f32.mrf.mxu0  ;;  %2106 = vmax.xlane.f32.xlu0 %v2105_v36  ;;  %v3234_v39 = vpop.f32.mrf.mxu1 }
0x1582   :  { %v2099_v40 = vpop.f32.mrf.mxu1 }
0x1584   :  { %v3235_v41 = vpop.f32.mrf.mxu1 }
0x158d   :  { %2174 = vrot.lane.b32.xlu1 %v3957_v12, %s3526_s20 }
0x1596   :  { %2126 = vrot.lane.b32.xlu0 %v3955_v11, %s3526_s20 }
0x1605   :  { %v2104_v43 = vpop.xlane.xlu1 %2103 }
0x1606   :  { %v2108_v44 = vsub.f32 %v2046_v1, %v2104_v43 }
0x1608   :  { %v2110_v45 = vmul.f32 1.442695, %v2108_v44 }
0x1609   :  { %v2175_v17 = vpop.permute.xlu1 %2174  ;;  %v2107_v21 = vpop.xlane.xlu0 %2106 }
0x160a   :  { %3423 = vpow2.f32 %v2110_v45  ;;  %v2180_v46 = vsel %vm336_vm3, %v2175_v17, 0  ;;  %v2109_v47 = vsub.f32 %v2096_v35, %v2107_v21 }
0x160b   :  { %3243 = vmatpush3.bf16.msra.mxu1 %v2180_v46 }
0x160c   :  { %v2112_v48 = vmul.f32 1.442695, %v2109_v47  ;;  %3254 = vmatprep.subr.bf16.mxu1 %v3519_v0 }
0x160d   :  { %v2127_v51 = vpop.permute.xlu0 %2126 }
0x160e   :  { %3425 = vpow2.f32 %v2112_v48  ;;  %v2132_v52 = vsel %vm336_vm3, %v2127_v51, 0 }
0x160f   :  { %3237 = vmatpush3.bf16.msra.mxu0 %v2132_v52 }
0x1610   :  { %3248 = vmatprep.subr.bf16.mxu0 %v3519_v0 }
0x1617   :  { %v3424_v53 = vpop.eup %3423 }
0x1618   :  { %v2114_v54 = vsel %vm213_vm2, %v3424_v53, 0.0 }
0x1619   :  { %2115 = vadd.xlane.f32.xlu0 %v2114_v54  ;;  %v3360_v54 = vld [vmem:[%s4179_s4 + $0x10] sm:$0xff]  }
0x161b   :  { %v3426_v55 = vpop.eup %3425 }
0x161c   :  { %v2117_v56 = vsel %vm213_vm2, %v3426_v55, 0.0 }
0x161d   :  { %2118 = vadd.xlane.f32.xlu1 %v2117_v56 }
0x162e   :  { %2224 = vrot.lane.b32.xlu1 %v3928_v38, %s3527_s21 }
0x162f   :  { %2274 = vrot.lane.b32.xlu0 %v3932_v42, %s3527_s21 }
0x1632   :  { %2222 = vrot.lane.b32.xlu1 %v3928_v38, %s3528_s22 }
0x1633   :  { %2272 = vrot.lane.b32.xlu0 %v3932_v42, %s3528_s22 }
0x16a2   :  { %v2116_v57 = vpop.xlane.xlu0 %2115 }
0x16a3   :  { %3427 = vrcp.f32 %v2116_v57 }
0x16a6   :  { %v2119_v58 = vpop.xlane.xlu1 %2118  ;;  %v2275_v6 = vpop.permute.xlu0 %2274 }
0x16a7   :  { %3429 = vrcp.f32 %v2119_v58  ;;  %v2280_v42 = vsel %vm213_vm2, %v2275_v6, 0 }
0x16aa   :  { %v2225_v59 = vpop.permute.xlu1 %2224  ;;  %v2273_v8 = vpop.permute.xlu0 %2272 }
0x16ab   :  { %v2230_v2 = vsel %vm213_vm2, %v2225_v59, 0 }
0x16ae   :  { %v2223_v7 = vpop.permute.xlu1 %2222 }
0x16b0   :  { %v3428_v10 = vpop.eup %3427 }
0x16b1   :  { %v2122_v13 = vmul.f32 %v3428_v10, %v3424_v53  ;;  %v3359_v53 = vld [vmem:[%s4179_s4 + $0x18] sm:$0xff]   ;;  %s2803_s4 = sshll.u32 %s3531_s15, 4  ;;  %s2804_s4 = int_to_ptr.vmem [resolvable:$true] %s2803_s4 }
0x16b2   :  { %s3489_s18 = scalar_lea.vmem %s2804_s4, 256  ;;  %p3494_p11 = scmp.lt.s32.totalorder %s2804_s4, %s2804_s4 }
0x16b3   :  { %v2124_v61 = vpack.c.bf16 %v2122_v13, %v2122_v13  ;;  %p3490_p10 = scmp.ne.s32.totalorder %s2804_s4, %s3489_s18  ;;  %p3495_p12 = scmp.lt.s32.totalorder %s3489_s18, %s3489_s18 }
0x16b4   :  { %v3430_v62 = vpop.eup %3429 }
0x16b5   :  { %3239 = vmatmul.mubr.msk.bf16.vlgmr.msra.gmra.mxu0 %vm213_vm2, %v2124_v61  ;;  %v2123_v5 = vmul.f32 %v3430_v62, %v3426_v55  ;;  %p3496_p13 = por %p3495_p12, %p3494_p11 }
0x16b6   :  { %3249 = vmatpush3.bf16.xpose.msra.mxu0 %v2230_v2  ;;  %3250 = vmatprep.mubr.msk.bf16.mxu0 %vm3520_vm0, %v3519_v0 }
0x16b7   :  { %v2125_v38 = vpack.c.bf16 %v2123_v5, %v2123_v5  ;;  %3260 = vmatprep.subr.bf16.mxu0 %v3519_v0  ;;  %p3497_p0 = pnand %p3496_p13, %p3490_p10 }
0x16b9   :  { %3245 = vmatmul.mubr.msk.bf16.vlgmr.msra.gmra.mxu1 %vm213_vm2, %v2125_v38 }
0x16ba   :  { %3255 = vmatpush3.bf16.xpose.msra.mxu1 %v2280_v42  ;;  %3256 = vmatprep.mubr.msk.bf16.mxu1 %vm3520_vm0, %v3519_v0 }
0x16bb   :  { %3266 = vmatprep.subr.bf16.mxu1 %v3519_v0 }
0x16bd   :  { %3251 = vmatmul.mubr.msk.bf16.vlgmr.msra.gmra.mxu0 %vm213_vm2, %v2223_v7 }
0x16be   :  { %3262 = vmatprep.mubr.msk.bf16.mxu0 %vm3520_vm0, %v3519_v0 }
0x16c1   :  { %3257 = vmatmul.mubr.msk.bf16.vlgmr.msra.gmra.mxu1 %vm213_vm2, %v2273_v8 }
0x16c2   :  { %3268 = vmatprep.mubr.msk.bf16.mxu1 %vm3520_vm0, %v3519_v0 }
0x1775   :  { %v2168_v9 = vpop.f32.mrf.mxu0 }
0x1777   :  { %v3240_v14 = vpop.f32.mrf.mxu0 }
0x1779   :  { %v2171_v15 = vpop.f32.mrf.mxu0  ;;  %v2216_v16 = vpop.f32.mrf.mxu1 }
0x177a   :  { %v3337_v18 = vpack.i.bf16 %v2216_v16, %v2168_v9 }
0x177b   :  { %v3241_v19 = vpop.f32.mrf.mxu0  ;;  %v3246_v3 = vpop.f32.mrf.mxu1 }
0x177d   :  { %v2219_v20 = vpop.f32.mrf.mxu1  ;;  %v2266_v22 = vpop.f32.mrf.mxu0 }
0x177e   :  { %v2322_v4 = vsel %vm213_vm2, %v2266_v22, -inf }
0x177f   :  { %2323 = vmax.xlane.f32.xlu1 %v2322_v4  ;;  %v3247_v24 = vpop.f32.mrf.mxu1  ;;  %v3252_v25 = vpop.f32.mrf.mxu0 }
0x1781   :  { %v2269_v28 = vpop.f32.mrf.mxu0  ;;  %v2316_v60 = vpop.f32.mrf.mxu1 }
0x1782   :  { %v2325_v63 = vsel %vm213_vm2, %v2316_v60, -inf }
0x1783   :  { %v3253_v1 = vpop.f32.mrf.mxu0  ;;  %2326 = vmax.xlane.f32.xlu0 %v2325_v63  ;;  %v3258_v29 = vpop.f32.mrf.mxu1 }
0x1785   :  { %v2319_v30 = vpop.f32.mrf.mxu1 }
0x1787   :  { %v3259_v32 = vpop.f32.mrf.mxu1 }
0x1808   :  { %v2324_v33 = vpop.xlane.xlu1 %2323 }
0x1809   :  { %v2328_v35 = vsub.f32 %v2266_v22, %v2324_v33 }
0x180b   :  { %v2330_v36 = vmul.f32 1.442695, %v2328_v35 }
0x180c   :  { %v2327_v37 = vpop.xlane.xlu0 %2326 }
0x180d   :  { %3431 = vpow2.f32 %v2330_v36  ;;  %v2329_v39 = vsub.f32 %v2316_v60, %v2327_v37 }
0x180f   :  { %v2332_v40 = vmul.f32 1.442695, %v2329_v39 }
0x1811   :  { %3433 = vpow2.f32 %v2332_v40 }
0x181a   :  { %v3432_v41 = vpop.eup %3431 }
0x181b   :  { %v2334_v43 = vsel %vm213_vm2, %v3432_v41, 0.0 }
0x181c   :  { %2335 = vadd.xlane.f32.xlu0 %v2334_v43 }
0x181e   :  { %v3434_v44 = vpop.eup %3433 }
0x181f   :  { %v2337_v45 = vsel %vm213_vm2, %v3434_v44, 0.0 }
0x1820   :  { %2338 = vadd.xlane.f32.xlu1 %v2337_v45  ;;  %v3363_v45 = vld [vmem:[%s4185_s10 + $0x38] sm:$0xff]  }
0x1831   :  { %2394 = vrot.lane.b32.xlu1 %v3957_v12, %s3528_s22 }
0x1832   :  { %2346 = vrot.lane.b32.xlu0 %v3955_v11, %s3528_s22 }
0x1835   :  { %3333 = vrot.lane.b32.xlu1 %v3332_v27, %s3517_s17 }
0x1836   :  { %3338 = vrot.lane.b32.xlu0 %v3337_v18, %s3529_s23 }
0x18a5   :  { %v2336_v17 = vpop.xlane.xlu0 %2335 }
0x18a6   :  { %3435 = vrcp.f32 %v2336_v17 }
0x18a9   :  { %v2339_v21 = vpop.xlane.xlu1 %2338  ;;  %v2347_v46 = vpop.permute.xlu0 %2346 }
0x18aa   :  { %3437 = vrcp.f32 %v2339_v21  ;;  %v2352_v47 = vsel %vm336_vm3, %v2347_v46, 0 }
0x18ab   :  { %3261 = vmatpush3.bf16.msra.mxu0 %v2352_v47 }
0x18ac   :  { %3272 = vmatprep.subr.bf16.mxu0 %v3519_v0 }
0x18ad   :  { %v2395_v12 = vpop.permute.xlu1 %2394  ;;  %v3339_v38 = vpop.permute.xlu0 %3338 }
0x18ae   :  { %v2400_v11 = vsel %vm336_vm3, %v2395_v12, 0  ;;  %v3341_v8 = vunpack.i.h.bf16 %v3339_v38  ;;  %v3340_v9 = vunpack.i.l.bf16 %v3339_v38 }
0x18af   :  { %3267 = vmatpush3.bf16.msra.mxu1 %v2400_v11 }
0x18b0   :  { %3280 = vmatprep.subr.bf16.mxu1 %v3519_v0 }
0x18b1   :  { %v3334_v2 = vpop.permute.xlu1 %3333 }
0x18b2   :  { %v3336_v5 = vunpack.i.h.bf16 %v3334_v2  ;;  %v3335_v6 = vunpack.i.l.bf16 %v3334_v2 }
0x18b3   :  { %v3436_v23 = vpop.eup %3435 }
0x18b4   :  { %v2342_v26 = vmul.f32 %v3436_v23, %v3432_v41  ;;  %v2467_v42 = vsel %vm213_vm2, %v3989_v34, %v3336_v5  ;;  %v2466_v7 = vsel %vm213_vm2, %v3987_v31, %v3335_v6  ;;  %v2886_v31 = vld [vmem:[%s4180_s5 + $0x1] ss:$0 sm:$0xff] }
0x18b5   :  { %v2468_v18 = vsel %vm1114_vm4, %v2466_v7, %v3340_v9  ;;  %v2469_v19 = vsel %vm1114_vm4, %v2467_v42, %v3341_v8 }
0x18b6   :  { %v2344_v27 = vpack.c.bf16 %v2342_v26, %v2342_v26 }
0x18b7   :  { %v3438_v48 = vpop.eup %3437 }
0x18b8   :  { %3263 = vmatmul.mubr.msk.bf16.vlgmr.msra.gmra.mxu0 %vm213_vm2, %v2344_v27  ;;  %v2343_v51 = vmul.f32 %v3438_v48, %v3434_v44  ;;  %v3362_v44 = vld [vmem:[%s4183_s8 + $0x10] sm:$0xff]   ;;  %v2892_v27 = vld [vmem:[%s4181_s6 + $0x1] ss:$0 sm:$0xff] }
0x18b9   :  { %3276 = vmatprep.mubr.msk.bf16.mxu0 %vm3520_vm0, %v3519_v0  ;;  %3273 = vmatpush3.bf16.msra.mxu0 %v3359_v53  ;;  %v2893_v53 = vld [vmem:[%s4182_s7 + $0x1] ss:$0 sm:$0xff] }
0x18ba   :  { %v2345_v52 = vpack.c.bf16 %v2343_v51, %v2343_v51  ;;  %3274 = vmatprep.subr.bf16.mxu0 %v3519_v0 }
0x18bc   :  { %3269 = vmatmul.mubr.msk.bf16.vlgmr.msra.gmra.mxu1 %vm213_vm2, %v2345_v52 }
0x18bd   :  { %3284 = vmatprep.mubr.msk.bf16.mxu1 %vm3520_vm0, %v3519_v0  ;;  %3275 = vmatpush3.bf16.msra.mxu0 %v3360_v54 }
0x18be   :  { %3288 = vmatprep.subr.bf16.mxu0 %v3519_v0 }
0x1978   :  { %v2388_v55 = vpop.f32.mrf.mxu0 }
0x197a   :  { %v3264_v56 = vpop.f32.mrf.mxu0 }
0x197c   :  { %v2391_v57 = vpop.f32.mrf.mxu0  ;;  %v2436_v58 = vpop.f32.mrf.mxu1 }
0x197d   :  { %v3342_v10 = vpack.i.bf16 %v2436_v58, %v2388_v55  ;;  %v3364_v58 = vld [vmem:[%s4185_s10 + $0x30] sm:$0xff]  }
0x197e   :  { %v3265_v13 = vpop.f32.mrf.mxu0  ;;  %v3270_v59 = vpop.f32.mrf.mxu1 }
0x197f   :  { %3343 = vrot.lane.b32.xlu1 %v3342_v10, %s3530_s26  ;;  %v3365_v10 = vld [vmem:[%s4185_s10 + $0x28] sm:$0xff]   ;;  %v3366_v13 = vld [vmem:[%s4185_s10 + $0x20] sm:$0xff]  }
0x1980   :  { %v2439_v61 = vpop.f32.mrf.mxu1  ;;  %v2899_v59 = vld [vmem:[%s4184_s9 + $0x1] ss:$0 sm:$0xff] }
0x1982   :  { %v3271_v62 = vpop.f32.mrf.mxu1 }
0x19f1   :  { %v3344_v14 = vpop.permute.xlu1 %3343 }
0x19f2   :  { %v3346_v15 = vunpack.i.h.bf16 %v3344_v14  ;;  %v3345_v16 = vunpack.i.l.bf16 %v3344_v14 }
0x19f4   :  { %v2471_v3 = vsel %vm1117_vm5, %v2469_v19, %v3346_v15  ;;  %v2470_v20 = vsel %vm1117_vm5, %v2468_v18, %v3345_v16 }
0x19f5   :  { %v2472_v22 = vpack.c.bf16 %v2471_v3, %v2470_v20 }
0x19f7   :  { %3277 = vmatmul.mubr.msk.bf16.vlgmr.msra.gmra.mxu0 %vm107_vm1, %v2472_v22 }
0x19f8   :  { %3296 = vmatprep.mubr.msk.bf16.mxu0 %vm3520_vm0, %v3519_v0  ;;  %3289 = vmatpush3.bf16.msra.mxu0 %v3363_v45 }
0x19f9   :  { %3290 = vmatprep.subr.bf16.mxu0 %v3519_v0 }
0x19fc   :  { %3291 = vmatpush3.bf16.msra.mxu0 %v3364_v58 }
0x19fd   :  { %3292 = vmatprep.subr.bf16.mxu0 %v3519_v0 }
0x1a00   :  { %3293 = vmatpush3.bf16.msra.mxu0 %v3365_v10 }
0x1a01   :  { %3294 = vmatprep.subr.bf16.mxu0 %v3519_v0 }
0x1a04   :  { %3295 = vmatpush3.bf16.msra.mxu0 %v3366_v13 }
0x1ab7   :  { %v2535_v34 = vpop.f32.mrf.mxu0 }
0x1ab8   :  { %v2536_v4 = vadd.f32 %v2886_v31, %v2535_v34 }
0x1ab9   :  { %v3278_v24 = vpop.f32.mrf.mxu0 }
0x1aba   :  { %v2542_v25 = vadd.f32 %v2536_v4, %v3909_v50 }
0x1abb   :  { %v2538_v28 = vpop.f32.mrf.mxu0 }
0x1abc   :  { %v2539_v60 = vadd.f32 %v2886_v31, %v2538_v28  ;;  %v2548_v63 = vsel %vm107_vm1, %v2542_v25, 0.0 }
0x1abd   :  { %2549 = vadd.xlane.f32.xlu0 %v2548_v63  ;;  %v3279_v1 = vpop.f32.mrf.mxu0 }
0x1abe   :  { %v2543_v29 = vadd.f32 %v2539_v60, %v3911_v49  ;;  %v3361_v49 = vld [vmem:[%s4183_s8 + $0x18] sm:$0xff]  }
0x1abf   :  { %3281 = vmatpush3.bf16.msra.mxu1 %v3361_v49 }
0x1ac0   :  { %v2551_v30 = vsel %vm107_vm1, %v2543_v29, 0.0  ;;  %3282 = vmatprep.subr.bf16.mxu1 %v3519_v0  ;;  %v2912_v0 = vld [vmem:[%s4186_s11 + $0x1] ss:$0 sm:$0xff] }
0x1ac1   :  { %2552 = vadd.xlane.f32.xlu1 %v2551_v30 }
0x1ac3   :  { %3283 = vmatpush3.bf16.msra.mxu1 %v3362_v44 }
0x1b46   :  { %v2550_v32 = vpop.xlane.xlu0 %2549 }
0x1b47   :  { %v2554_v33 = vmul.f32 0.03125, %v2550_v32 }
0x1b49   :  { %v2556_v35 = vsub.f32 %v2542_v25, %v2554_v33 }
0x1b4a   :  { %v2553_v36 = vpop.xlane.xlu1 %2552 }
0x1b4b   :  { %v2555_v37 = vmul.f32 0.03125, %v2553_v36  ;;  %v2558_v39 = vmul.f32 %v2556_v35, %v2556_v35 }
0x1b4d   :  { %v2557_v40 = vsub.f32 %v2543_v29, %v2555_v37  ;;  %v2560_v50 = vsel %vm107_vm1, %v2558_v39, 0.0 }
0x1b4e   :  { %2561 = vadd.xlane.f32.xlu0 %v2560_v50  ;;  %v2920_v50 = vld [vmem:[%s4187_s12 + $0x1] ss:$0 sm:$0xff] }
0x1b4f   :  { %v2559_v41 = vmul.f32 %v2557_v40, %v2557_v40 }
0x1b51   :  { %v2563_v43 = vsel %vm107_vm1, %v2559_v41, 0.0 }
0x1b52   :  { %2564 = vadd.xlane.f32.xlu0 %v2563_v43  ;;  %v2921_v43 = vld [vmem:[%s4188_s13 + $0x1] ss:$0 sm:$0xff] }
0x1bd7   :  { %v2562_v17 = vpop.xlane.xlu0 %2561 }
0x1bd8   :  { %v2566_v21 = vmul.f32 0.03125, %v2562_v17 }
0x1bda   :  { %v2568_v46 = vadd.f32 1e-05, %v2566_v21 }
0x1bdb   :  { %v2565_v47 = vpop.xlane.xlu0 %2564 }
0x1bdc   :  { %3439 = vrsqrt.f32 %v2568_v46  ;;  %v2567_v12 = vmul.f32 0.03125, %v2565_v47 }
0x1bde   :  { %v2569_v11 = vadd.f32 1e-05, %v2567_v12 }
0x1be0   :  { %3441 = vrsqrt.f32 %v2569_v11 }
0x1be9   :  { %v3440_v23 = vpop.eup %3439 }
0x1bea   :  { %v2572_v26 = vmul.f32 %v3440_v23, %v2556_v35 }
0x1bec   :  { %v2580_v52 = vmul.f32 %v2892_v27, %v2572_v26 }
0x1bed   :  { %v3442_v48 = vpop.eup %3441 }
0x1bee   :  { %v2573_v51 = vmul.f32 %v3442_v48, %v2557_v40  ;;  %v2588_v55 = vadd.f32 %v2893_v53, %v2580_v52 }
0x1bf0   :  { %v2581_v54 = vmul.f32 %v2892_v27, %v2573_v51 }
0x1bf2   :  { %v2589_v56 = vadd.f32 %v2893_v53, %v2581_v54 }
0x1bf4   :  { %v2590_v57 = vpack.c.bf16 %v2589_v56, %v2588_v55 }
0x1bf6   :  { %3285 = vmatmul.mubr.msk.bf16.vlgmr.msra.gmra.mxu1 %vm107_vm1, %v2590_v57 }
0x1cb6   :  { %v2653_v61 = vpop.f32.mrf.mxu1 }
0x1cb7   :  { %v2654_v2 = vadd.f32 %v2899_v59, %v2653_v61 }
0x1cb8   :  { %v3286_v62 = vpop.f32.mrf.mxu1 }
0x1cb9   :  { %v2660_v42 = vmax.f32 %v2654_v2, 0.0 }
0x1cba   :  { %v2656_v5 = vpop.f32.mrf.mxu1 }
0x1cbb   :  { %v2657_v6 = vadd.f32 %v2899_v59, %v2656_v5 }
0x1cbc   :  { %v3287_v38 = vpop.f32.mrf.mxu1 }
0x1cbd   :  { %v2661_v7 = vmax.f32 %v2657_v6, 0.0 }
0x1cbf   :  { %v2662_v8 = vpack.c.bf16 %v2661_v7, %v2660_v42 }
0x1cc1   :  { %3297 = vmatmul.mubr.msk.bf16.vlgmr.msra.gmra.mxu0 %vm1345_vm6, %v2662_v8 }
0x1d81   :  { %v2741_v9 = vpop.f32.mrf.mxu0 }
0x1d82   :  { %v2742_v14 = vadd.f32 %v2912_v0, %v2741_v9 }
0x1d83   :  { %v3298_v15 = vpop.f32.mrf.mxu0 }
0x1d84   :  { %v2748_v16 = vadd.f32 %v2742_v14, %v2588_v55 }
0x1d85   :  { %v2744_v18 = vpop.f32.mrf.mxu0 }
0x1d86   :  { %v2745_v19 = vadd.f32 %v2912_v0, %v2744_v18  ;;  %v2754_v3 = vsel %vm107_vm1, %v2748_v16, 0.0 }
0x1d87   :  { %2755 = vadd.xlane.f32.xlu1 %v2754_v3  ;;  %v3299_v20 = vpop.f32.mrf.mxu0 }
0x1d88   :  { %v2749_v22 = vadd.f32 %v2745_v19, %v2589_v56 }
0x1d8a   :  { %v2757_v31 = vsel %vm107_vm1, %v2749_v22, 0.0 }
0x1d8b   :  { %2758 = vadd.xlane.f32.xlu0 %v2757_v31 }
0x1e10   :  { %v2756_v34 = vpop.xlane.xlu1 %2755 }
0x1e11   :  { %v2760_v4 = vmul.f32 0.03125, %v2756_v34 }
0x1e13   :  { %v2762_v24 = vsub.f32 %v2748_v16, %v2760_v4 }
0x1e14   :  { %v2759_v25 = vpop.xlane.xlu0 %2758 }
0x1e15   :  { %v2761_v28 = vmul.f32 0.03125, %v2759_v25  ;;  %v2764_v60 = vmul.f32 %v2762_v24, %v2762_v24 }
0x1e17   :  { %v2763_v63 = vsub.f32 %v2749_v22, %v2761_v28  ;;  %v2766_v1 = vsel %vm107_vm1, %v2764_v60, 0.0 }
0x1e18   :  { %2767 = vadd.xlane.f32.xlu1 %v2766_v1 }
0x1e19   :  { %v2765_v29 = vmul.f32 %v2763_v63, %v2763_v63 }
0x1e1b   :  { %v2769_v30 = vsel %vm107_vm1, %v2765_v29, 0.0 }
0x1e1c   :  { %2770 = vadd.xlane.f32.xlu0 %v2769_v30 }
0x1ea1   :  { %v2768_v32 = vpop.xlane.xlu1 %2767 }
0x1ea2   :  { %v2772_v33 = vmul.f32 0.03125, %v2768_v32 }
0x1ea4   :  { %v2774_v35 = vadd.f32 1e-05, %v2772_v33 }
0x1ea5   :  { %v2771_v36 = vpop.xlane.xlu0 %2770 }
0x1ea6   :  { %3443 = vrsqrt.f32 %v2774_v35  ;;  %v2773_v37 = vmul.f32 0.03125, %v2771_v36 }
0x1ea8   :  { %v2775_v39 = vadd.f32 1e-05, %v2773_v37 }
0x1eaa   :  { %3445 = vrsqrt.f32 %v2775_v39 }
0x1eb3   :  { %v3444_v40 = vpop.eup %3443 }
0x1eb4   :  { %v2778_v41 = vmul.f32 %v3444_v40, %v2762_v24 }
0x1eb6   :  { %v2786_v49 = vmul.f32 %v2920_v50, %v2778_v41 }
0x1eb7   :  { %v3446_v44 = vpop.eup %3445 }
0x1eb8   :  { %v2779_v45 = vmul.f32 %v3446_v44, %v2763_v63  ;;  %v2794_v17 = vadd.f32 %v2921_v43, %v2786_v49 }
0x1eba   :  { %v2787_v21 = vmul.f32 %v2920_v50, %v2779_v45  ;;  %2796 = vst.msk [vmem:[#allocation7] sm:$0xff] %vm107_vm1, %v2794_v17 }
0x1ebc   :  { %v2795_v46 = vadd.f32 %v2921_v43, %v2787_v21 }
0x1ebe   :  { %2797 = vst.msk [vmem:[#allocation7 + $0x8] sm:$0xff] %vm107_vm1, %v2795_v46 }
0x1ebf   :  { %3500 = shalt.err (!%p3497_p0)
}
0x1ec0   :  { %s4191_s12 = smov 128  }
0x1ec1   :  { %2809 = dma.vmem_to_hbm [thread:$0]  %s2804_s4, 256, %s4189_s14, [#allocation4], %s4191_s12, %s4191_s12, %s3517_s17  }
0x1ec2   :  { %3513 = dma.done.wait [#allocation4], 256  }
0x1ec3   :  { %3514 = vsyncadd [#allocation4], 4294967040 }
0x1ec4   :  { %2813 = vsyncpa [#allocation3], 1 }
0x1ec5   :  { %2814 = vsyncpa [#allocation6], 1 }
0x1ec6   :  { %2815 = vsyncpa [#allocation4], 1 }

</bundles_post_ra>
